<compile_context>
chip_gen: v6e
topology: v6e:2x2x1
jax: 0.10.0
libtpu: 0.0.40
codegen_flags: <defaults>
</compile_context>

<pallas_src>
import functools
from typing import NamedTuple

import numpy as np

import jax
import jax.numpy as jnp
from jax import lax
from jax.experimental import pallas as pl
from jax.experimental.pallas import tpu as pltpu


def _round_up(x, m):
    return (x + m - 1) // m * m


# ----------------------------------------------------------------------------
# Init-time parameter preparation (hoisted out of the per-step forward).
# ----------------------------------------------------------------------------
class Geom(NamedTuple):
    cin: int
    h: int
    w: int
    oh1: int
    ow1: int
    oh2: int
    ow2: int
    oh3: int
    ow3: int
    n_actions: int


def _stack_weights(w_oihw):
    """(Cout, Cin, kH, kW) -> (kH*kW*Cin, Cout), rows ordered (kh, kw, cin)."""
    cout, cin, kh, kw = w_oihw.shape
    return (jnp.transpose(w_oihw, (2, 3, 1, 0))
            .reshape(kh * kw * cin, cout).astype(jnp.float32))


def prepare_params(params, input_shape, n_actions):
    """One-time weight/bias layout prep (runs eagerly at init, not per step)."""
    cin, h, w = input_shape
    oh1, ow1 = (h - 8) // 4 + 1, (w - 8) // 4 + 1
    oh2, ow2 = (oh1 - 4) // 2 + 1, (ow1 - 4) // 2 + 1
    oh3, ow3 = (oh2 - 3) // 1 + 1, (ow2 - 3) // 1 + 1
    conv_out = 64 * oh3 * ow3
    assert params["wfc1"].shape[0] == conv_out, (params["wfc1"].shape, conv_out)

    nap = _round_up(n_actions, 128)  # lane-dense final output width
    # fc1 viewed as a conv whose kernel spans the conv3 output spatial extent;
    # this also absorbs PyTorch's channel-major NCHW flatten ordering.
    wfc1_oihw = jnp.transpose(params["wfc1"], (1, 0)).reshape(512, 64, oh3, ow3)

    tensors = {
        "w1": _stack_weights(params["w1"]),
        "b1": params["b1"].astype(jnp.float32).reshape(1, -1),
        "w2": _stack_weights(params["w2"]),
        "b2": params["b2"].astype(jnp.float32).reshape(1, -1),
        "w3": _stack_weights(params["w3"]),
        "b3": params["b3"].astype(jnp.float32).reshape(1, -1),
        "wf1": _stack_weights(wfc1_oihw),
        "bf1": params["bfc1"].astype(jnp.float32).reshape(1, -1),
        "wf2": jnp.zeros((512, nap), jnp.float32)
               .at[:, :n_actions].set(params["wfc2"].astype(jnp.float32)),
        "bf2": jnp.zeros((1, nap), jnp.float32)
               .at[0, :n_actions].set(params["bfc2"].astype(jnp.float32)),
    }
    geom = Geom(cin, h, w, oh1, ow1, oh2, ow2, oh3, ow3, n_actions)
    return tensors, geom


# ----------------------------------------------------------------------------
# Trace-time constants: 0/1 gather matrices (per batch size / geometry) and
# the conv1 im2col (a handful of XLA ops on the wrapper side).
# ----------------------------------------------------------------------------
@functools.lru_cache(maxsize=None)
def _gather_matrix(n, ih, iw, kh, kw, s, m_in_rows):
    """G of shape (kh*kw*m_out_r, m_in_rows): for kernel offset o,
    G[o*m_out_r:(o+1)*m_out_r] @ A selects the input rows (indexed (n,ih,iw)
    row-major) feeding each conv output position. Pad rows are zero."""
    oh = (ih - kh) // s + 1
    ow = (iw - kw) // s + 1
    m_out_r = _round_up(n * oh * ow, 8)
    g = np.zeros((kh * kw * m_out_r, m_in_rows), np.float32)
    for o in range(kh * kw):
        ki, kj = divmod(o, kw)
        for b in range(n):
            for y in range(oh):
                for x in range(ow):
                    mo = o * m_out_r + b * oh * ow + y * ow + x
                    mi = b * ih * iw + (y * s + ki) * iw + (x * s + kj)
                    g[mo, mi] = 1.0
    return g, m_out_r


def _im2col_conv1(x_nhwc, k, s):
    n, h, w, c = x_nhwc.shape
    oh = (h - k) // s + 1
    ow = (w - k) // s + 1
    ih = ((np.arange(oh)[:, None] * s + np.arange(k)[None, :])
          .reshape(-1).astype(np.int32))
    iw = ((np.arange(ow)[:, None] * s + np.arange(k)[None, :])
          .reshape(-1).astype(np.int32))
    p = jnp.take(x_nhwc, jnp.asarray(ih), axis=1)          # (n, oh*k, w, c)
    p = jnp.take(p, jnp.asarray(iw), axis=2)               # (n, oh*k, ow*k, c)
    p = p.reshape(n, oh, k, ow, k, c).transpose(0, 1, 3, 2, 4, 5)
    # rows ordered (n, oh, ow); features ordered (kh, kw, cin)
    return p.reshape(n * oh * ow, k * k * c)


# ----------------------------------------------------------------------------
# The fused Pallas kernel: conv1 matmul, then three "gathered" layers
# (conv2, conv3, flatten+fc1), then fc2.  Everything is f32 2-D MXU matmuls.
# ----------------------------------------------------------------------------
def _fused_dqn_kernel(p1_ref, w1_ref, b1_ref,
                      g2_ref, w2_ref, b2_ref,
                      g3_ref, w3_ref, b3_ref,
                      gf_ref, wf1_ref, bf1_ref,
                      wf2_ref, bf2_ref, out_ref, *, layer_dims):
    f32 = jnp.float32

    def gathered_layer(x, g_ref, w_ref, b_ref, dims):
        n_off, m_out_r, c_in, c_out = dims
        # One matmul against the stacked 0/1 selection matrix gathers the
        # input rows for every kernel offset at once; then one small weight
        # matmul per offset accumulates the conv output in f32.  All slice
        # offsets are static multiples of 8 (sublane-aligned).
        rows = jnp.dot(g_ref[...], x, preferred_element_type=f32)
        acc = jnp.zeros((m_out_r, c_out), f32)
        for o in range(n_off):
            acc = acc + jnp.dot(rows[o * m_out_r:(o + 1) * m_out_r, :],
                                w_ref[pl.ds(o * c_in, c_in), :],
                                preferred_element_type=f32)
        return acc + b_ref[...]

    # conv1 (+ReLU); im2col patches built by the wrapper
    a = jnp.maximum(
        jnp.dot(p1_ref[...], w1_ref[...], preferred_element_type=f32)
        + b1_ref[...], 0.0)
    # conv2, conv3, flatten+fc1 (+ReLU)
    a = jnp.maximum(gathered_layer(a, g2_ref, w2_ref, b2_ref, layer_dims[0]), 0.0)
    a = jnp.maximum(gathered_layer(a, g3_ref, w3_ref, b3_ref, layer_dims[1]), 0.0)
    a = jnp.maximum(gathered_layer(a, gf_ref, wf1_ref, bf1_ref, layer_dims[2]), 0.0)
    # fc2 (no ReLU), lane-dense 128-wide output (unmasked vst)
    out_ref[...] = (jnp.dot(a, wf2_ref[...], preferred_element_type=f32)
                    + bf2_ref[...])


def dqn_forward(tensors, geom, x_nchw):
    g = geom
    n = x_nchw.shape[0]
    x = jnp.transpose(x_nchw, (0, 2, 3, 1)).astype(jnp.float32)     # NHWC
    p1 = _im2col_conv1(x, 8, 4)                                     # (n*oh1*ow1, 64*cin)
    m1 = n * g.oh1 * g.ow1

    # 0/1 gather matrices; pure functions of static shapes -> XLA constants.
    g2, m2r = _gather_matrix(n, g.oh1, g.ow1, 4, 4, 2, m1)
    g3, m3r = _gather_matrix(n, g.oh2, g.ow2, 3, 3, 1, m2r)
    gf, mfr = _gather_matrix(n, g.oh3, g.ow3, g.oh3, g.ow3, 1, m3r)

    layer_dims = ((16, m2r, 32, 64),
                  (9, m3r, 64, 64),
                  (g.oh3 * g.ow3, mfr, 64, 512))
    nap = tensors["wf2"].shape[1]

    operands = (p1, tensors["w1"], tensors["b1"],
                jnp.asarray(g2), tensors["w2"], tensors["b2"],
                jnp.asarray(g3), tensors["w3"], tensors["b3"],
                jnp.asarray(gf), tensors["wf1"], tensors["bf1"],
                tensors["wf2"], tensors["bf2"])

    # Advisory cost estimate so XLA can overlap the surrounding glue ops.
    flops = 2 * m1 * (64 * g.cin) * 32
    for (n_off, m_out_r, c_in, c_out), m_in in zip(layer_dims, (m1, m2r, m3r)):
        flops += 2 * (n_off * m_out_r * m_in * c_in
                      + n_off * m_out_r * c_in * c_out)
    flops += 2 * mfr * 512 * nap
    bytes_accessed = (sum(int(np.prod(o.shape)) * 4 for o in operands)
                      + mfr * nap * 4)

    out = pl.pallas_call(
        functools.partial(_fused_dqn_kernel, layer_dims=layer_dims),
        out_shape=jax.ShapeDtypeStruct((mfr, nap), jnp.float32),
        grid=(1,),
        in_specs=[pl.BlockSpec(op.shape, lambda i: (0, 0)) for op in operands],
        out_specs=pl.BlockSpec((mfr, nap), lambda i: (0, 0)),
        compiler_params=pltpu.CompilerParams(
            dimension_semantics=("arbitrary",)),
        cost_estimate=pl.CostEstimate(flops=int(flops), transcendentals=0,
                                      bytes_accessed=int(bytes_accessed)),
    )(*operands)
    # Drop padded rows (batch) and padded lanes (actions) on the wrapper side.
    return out[:n, :g.n_actions]


# ----------------------------------------------------------------------------
# Deterministic synthetic parameter init (shapes per nn.Module __init__).
# ----------------------------------------------------------------------------
def init_params(key, in_channels, conv_out_size, n_actions):
    ks = jax.random.split(key, 10)

    def u(k, shape, fan_in):
        bound = 1.0 / jnp.sqrt(jnp.float32(fan_in))
        return jax.random.uniform(k, shape, jnp.float32, -bound, bound)

    return {
        "w1": u(ks[0], (32, in_channels, 8, 8), in_channels * 64),
        "b1": u(ks[1], (32,), in_channels * 64),
        "w2": u(ks[2], (64, 32, 4, 4), 32 * 16),
        "b2": u(ks[3], (64,), 32 * 16),
        "w3": u(ks[4], (64, 64, 3, 3), 64 * 9),
        "b3": u(ks[5], (64,), 64 * 9),
        "wfc1": u(ks[6], (conv_out_size, 512), conv_out_size),
        "bfc1": u(ks[7], (512,), conv_out_size),
        "wfc2": u(ks[8], (512, n_actions), 512),
        "bfc2": u(ks[9], (n_actions,), 512),
    }


# Pure-JAX reference for correctness checking (uses the raw PyTorch-layout params).
def reference_forward(params, x):
    def conv(x, w, b, s):
        y = lax.conv_general_dilated(
            x, w, (s, s), "VALID", dimension_numbers=("NCHW", "OIHW", "NCHW"))
        return jax.nn.relu(y + b[None, :, None, None])

    x = conv(x, params["w1"], params["b1"], 4)
    x = conv(x, params["w2"], params["b2"], 2)
    x = conv(x, params["w3"], params["b3"], 1)
    x = x.reshape(x.shape[0], -1)
    x = jax.nn.relu(x @ params["wfc1"] + params["bfc1"])
    return x @ params["wfc2"] + params["bfc2"]


if __name__ == "__main__":
    # Small shapes consistent with the module: input_shape=(4, 36, 36) gives
    # conv spatial path 36 -> 8 -> 3 -> 1, so conv_out_size = 64 * 1 * 1.
    batch, in_ch, hw, n_actions = 2, 4, 36, 5
    input_shape = (in_ch, hw, hw)
    o1 = (hw - 8) // 4 + 1
    o2 = (o1 - 4) // 2 + 1
    o3 = (o2 - 3) // 1 + 1
    conv_out_size = 64 * o3 * o3

    key = jax.random.PRNGKey(0)
    kx, kp = jax.random.split(key)
    x = jax.random.normal(kx, (batch, in_ch, hw, hw), jnp.float32)
    params = init_params(kp, in_ch, conv_out_size, n_actions)

    tensors, geom = prepare_params(params, input_shape, n_actions)

    fwd = jax.jit(dqn_forward, static_argnums=(1,))
    out = jax.block_until_ready(fwd(tensors, geom, x))

    ref = reference_forward(params, x)
    assert out.shape == (batch, n_actions), out.shape
    max_err = float(jnp.max(jnp.abs(out - ref)))
    assert bool(jnp.allclose(out, ref, atol=1e-3, rtol=1e-3)), max_err

    print("KERNEL_OK")
</pallas_src>

<mosaic_0001>
module attributes {stable_mosaic.version = 11 : i64} {
  func.func @_fused_dqn_kernel(%arg0: i32, %arg1: memref<128x256xf32, #tpu.memory_space<vmem>>, %arg2: memref<256x32xf32, #tpu.memory_space<vmem>>, %arg3: memref<1x32xf32, #tpu.memory_space<vmem>>, %arg4: memref<384x128xf32, #tpu.memory_space<vmem>>, %arg5: memref<512x64xf32, #tpu.memory_space<vmem>>, %arg6: memref<1x64xf32, #tpu.memory_space<vmem>>, %arg7: memref<72x24xf32, #tpu.memory_space<vmem>>, %arg8: memref<576x64xf32, #tpu.memory_space<vmem>>, %arg9: memref<1x64xf32, #tpu.memory_space<vmem>>, %arg10: memref<8x8xf32, #tpu.memory_space<vmem>>, %arg11: memref<64x512xf32, #tpu.memory_space<vmem>>, %arg12: memref<1x512xf32, #tpu.memory_space<vmem>>, %arg13: memref<512x128xf32, #tpu.memory_space<vmem>>, %arg14: memref<1x128xf32, #tpu.memory_space<vmem>>, %arg15: memref<8x128xf32, #tpu.memory_space<vmem>>) attributes {dimension_semantics = [#tpu.dimension_semantics<arbitrary>], iteration_bounds = array<i64: 1>, scalar_prefetch = 0 : i64, scratch_operands = 0 : i64, tpu.core_type = #tpu.core_type<tc>, window_params = [{pipeline_mode = #tpu.pipeline_mode<synchronous>, transform_indices = @transform_0, window_bounds = array<i64: 128, 256>}, {pipeline_mode = #tpu.pipeline_mode<synchronous>, transform_indices = @transform_1, window_bounds = array<i64: 256, 32>}, {pipeline_mode = #tpu.pipeline_mode<synchronous>, transform_indices = @transform_2, window_bounds = array<i64: 1, 32>}, {pipeline_mode = #tpu.pipeline_mode<synchronous>, transform_indices = @transform_3, window_bounds = array<i64: 384, 128>}, {pipeline_mode = #tpu.pipeline_mode<synchronous>, transform_indices = @transform_4, window_bounds = array<i64: 512, 64>}, {pipeline_mode = #tpu.pipeline_mode<synchronous>, transform_indices = @transform_5, window_bounds = array<i64: 1, 64>}, {pipeline_mode = #tpu.pipeline_mode<synchronous>, transform_indices = @transform_6, window_bounds = array<i64: 72, 24>}, {pipeline_mode = #tpu.pipeline_mode<synchronous>, transform_indices = @transform_7, window_bounds = array<i64: 576, 64>}, {pipeline_mode = #tpu.pipeline_mode<synchronous>, transform_indices = @transform_8, window_bounds = array<i64: 1, 64>}, {pipeline_mode = #tpu.pipeline_mode<synchronous>, transform_indices = @transform_9, window_bounds = array<i64: 8, 8>}, {pipeline_mode = #tpu.pipeline_mode<synchronous>, transform_indices = @transform_10, window_bounds = array<i64: 64, 512>}, {pipeline_mode = #tpu.pipeline_mode<synchronous>, transform_indices = @transform_11, window_bounds = array<i64: 1, 512>}, {pipeline_mode = #tpu.pipeline_mode<synchronous>, transform_indices = @transform_12, window_bounds = array<i64: 512, 128>}, {pipeline_mode = #tpu.pipeline_mode<synchronous>, transform_indices = @transform_13, window_bounds = array<i64: 1, 128>}, {pipeline_mode = #tpu.pipeline_mode<synchronous>, transform_indices = @transform_14, window_bounds = array<i64: 8, 128>}]} {
    %c0 = arith.constant 0 : index
    %c0_0 = arith.constant 0 : index
    %0 = vector.load %arg1[%c0, %c0_0] : memref<128x256xf32, #tpu.memory_space<vmem>>, vector<128x256xf32>
    %c0_1 = arith.constant 0 : index
    %c0_2 = arith.constant 0 : index
    %1 = vector.load %arg2[%c0_1, %c0_2] : memref<256x32xf32, #tpu.memory_space<vmem>>, vector<256x32xf32>
    %cst = arith.constant dense<0.000000e+00> : vector<128x32xf32>
    %2 = tpu.matmul %0, %1, %cst {dimension_numbers = #tpu.dot_dimension_numbers<[1], [0], [0], [1], [0, 0, 1, 1], [], []>} : vector<128x256xf32>, vector<256x32xf32>, vector<128x32xf32> -> vector<128x32xf32>
    %c0_3 = arith.constant 0 : index
    %c0_4 = arith.constant 0 : index
    %3 = vector.load %arg3[%c0_3, %c0_4] : memref<1x32xf32, #tpu.memory_space<vmem>>, vector<1x32xf32>
    %4 = vector.broadcast %3 : vector<1x32xf32> to vector<128x32xf32>
    %5 = arith.addf %2, %4 : vector<128x32xf32>
    %cst_5 = arith.constant 0.000000e+00 : f32
    %6 = vector.broadcast %cst_5 : f32 to vector<128x32xf32>
    %7 = arith.maximumf %5, %6 : vector<128x32xf32>
    %c0_6 = arith.constant 0 : index
    %c0_7 = arith.constant 0 : index
    %8 = vector.load %arg4[%c0_6, %c0_7] : memref<384x128xf32, #tpu.memory_space<vmem>>, vector<384x128xf32>
    %cst_8 = arith.constant dense<0.000000e+00> : vector<384x32xf32>
    %9 = tpu.matmul %8, %7, %cst_8 {dimension_numbers = #tpu.dot_dimension_numbers<[1], [0], [0], [1], [0, 0, 1, 1], [], []>} : vector<384x128xf32>, vector<128x32xf32>, vector<384x32xf32> -> vector<384x32xf32>
    %cst_9 = arith.constant 0.000000e+00 : f32
    %10 = vector.broadcast %cst_9 : f32 to vector<24x64xf32>
    %11 = vector.extract_strided_slice %9 {offsets = [0, 0], sizes = [24, 32], strides = [1, 1]} : vector<384x32xf32> to vector<24x32xf32>
    %c0_10 = arith.constant 0 : index
    %c0_11 = arith.constant 0 : index
    %12 = vector.load %arg5[%c0_10, %c0_11] : memref<512x64xf32, #tpu.memory_space<vmem>>, vector<32x64xf32>
    %cst_12 = arith.constant dense<0.000000e+00> : vector<24x64xf32>
    %13 = tpu.matmul %11, %12, %cst_12 {dimension_numbers = #tpu.dot_dimension_numbers<[1], [0], [0], [1], [0, 0, 1, 1], [], []>} : vector<24x32xf32>, vector<32x64xf32>, vector<24x64xf32> -> vector<24x64xf32>
    %14 = arith.addf %10, %13 : vector<24x64xf32>
    %15 = vector.extract_strided_slice %9 {offsets = [24, 0], sizes = [24, 32], strides = [1, 1]} : vector<384x32xf32> to vector<24x32xf32>
    %c32 = arith.constant 32 : index
    %c0_13 = arith.constant 0 : index
    %16 = vector.load %arg5[%c32, %c0_13] : memref<512x64xf32, #tpu.memory_space<vmem>>, vector<32x64xf32>
    %cst_14 = arith.constant dense<0.000000e+00> : vector<24x64xf32>
    %17 = tpu.matmul %15, %16, %cst_14 {dimension_numbers = #tpu.dot_dimension_numbers<[1], [0], [0], [1], [0, 0, 1, 1], [], []>} : vector<24x32xf32>, vector<32x64xf32>, vector<24x64xf32> -> vector<24x64xf32>
    %18 = arith.addf %14, %17 : vector<24x64xf32>
    %19 = vector.extract_strided_slice %9 {offsets = [48, 0], sizes = [24, 32], strides = [1, 1]} : vector<384x32xf32> to vector<24x32xf32>
    %c64 = arith.constant 64 : index
    %c0_15 = arith.constant 0 : index
    %20 = vector.load %arg5[%c64, %c0_15] : memref<512x64xf32, #tpu.memory_space<vmem>>, vector<32x64xf32>
    %cst_16 = arith.constant dense<0.000000e+00> : vector<24x64xf32>
    %21 = tpu.matmul %19, %20, %cst_16 {dimension_numbers = #tpu.dot_dimension_numbers<[1], [0], [0], [1], [0, 0, 1, 1], [], []>} : vector<24x32xf32>, vector<32x64xf32>, vector<24x64xf32> -> vector<24x64xf32>
    %22 = arith.addf %18, %21 : vector<24x64xf32>
    %23 = vector.extract_strided_slice %9 {offsets = [72, 0], sizes = [24, 32], strides = [1, 1]} : vector<384x32xf32> to vector<24x32xf32>
    %c96 = arith.constant 96 : index
    %c0_17 = arith.constant 0 : index
    %24 = vector.load %arg5[%c96, %c0_17] : memref<512x64xf32, #tpu.memory_space<vmem>>, vector<32x64xf32>
    %cst_18 = arith.constant dense<0.000000e+00> : vector<24x64xf32>
    %25 = tpu.matmul %23, %24, %cst_18 {dimension_numbers = #tpu.dot_dimension_numbers<[1], [0], [0], [1], [0, 0, 1, 1], [], []>} : vector<24x32xf32>, vector<32x64xf32>, vector<24x64xf32> -> vector<24x64xf32>
    %26 = arith.addf %22, %25 : vector<24x64xf32>
    %27 = vector.extract_strided_slice %9 {offsets = [96, 0], sizes = [24, 32], strides = [1, 1]} : vector<384x32xf32> to vector<24x32xf32>
    %c128 = arith.constant 128 : index
    %c0_19 = arith.constant 0 : index
    %28 = vector.load %arg5[%c128, %c0_19] : memref<512x64xf32, #tpu.memory_space<vmem>>, vector<32x64xf32>
    %cst_20 = arith.constant dense<0.000000e+00> : vector<24x64xf32>
    %29 = tpu.matmul %27, %28, %cst_20 {dimension_numbers = #tpu.dot_dimension_numbers<[1], [0], [0], [1], [0, 0, 1, 1], [], []>} : vector<24x32xf32>, vector<32x64xf32>, vector<24x64xf32> -> vector<24x64xf32>
    %30 = arith.addf %26, %29 : vector<24x64xf32>
    %31 = vector.extract_strided_slice %9 {offsets = [120, 0], sizes = [24, 32], strides = [1, 1]} : vector<384x32xf32> to vector<24x32xf32>
    %c160 = arith.constant 160 : index
    %c0_21 = arith.constant 0 : index
    %32 = vector.load %arg5[%c160, %c0_21] : memref<512x64xf32, #tpu.memory_space<vmem>>, vector<32x64xf32>
    %cst_22 = arith.constant dense<0.000000e+00> : vector<24x64xf32>
    %33 = tpu.matmul %31, %32, %cst_22 {dimension_numbers = #tpu.dot_dimension_numbers<[1], [0], [0], [1], [0, 0, 1, 1], [], []>} : vector<24x32xf32>, vector<32x64xf32>, vector<24x64xf32> -> vector<24x64xf32>
    %34 = arith.addf %30, %33 : vector<24x64xf32>
    %35 = vector.extract_strided_slice %9 {offsets = [144, 0], sizes = [24, 32], strides = [1, 1]} : vector<384x32xf32> to vector<24x32xf32>
    %c192 = arith.constant 192 : index
    %c0_23 = arith.constant 0 : index
    %36 = vector.load %arg5[%c192, %c0_23] : memref<512x64xf32, #tpu.memory_space<vmem>>, vector<32x64xf32>
    %cst_24 = arith.constant dense<0.000000e+00> : vector<24x64xf32>
    %37 = tpu.matmul %35, %36, %cst_24 {dimension_numbers = #tpu.dot_dimension_numbers<[1], [0], [0], [1], [0, 0, 1, 1], [], []>} : vector<24x32xf32>, vector<32x64xf32>, vector<24x64xf32> -> vector<24x64xf32>
    %38 = arith.addf %34, %37 : vector<24x64xf32>
    %39 = vector.extract_strided_slice %9 {offsets = [168, 0], sizes = [24, 32], strides = [1, 1]} : vector<384x32xf32> to vector<24x32xf32>
    %c224 = arith.constant 224 : index
    %c0_25 = arith.constant 0 : index
    %40 = vector.load %arg5[%c224, %c0_25] : memref<512x64xf32, #tpu.memory_space<vmem>>, vector<32x64xf32>
    %cst_26 = arith.constant dense<0.000000e+00> : vector<24x64xf32>
    %41 = tpu.matmul %39, %40, %cst_26 {dimension_numbers = #tpu.dot_dimension_numbers<[1], [0], [0], [1], [0, 0, 1, 1], [], []>} : vector<24x32xf32>, vector<32x64xf32>, vector<24x64xf32> -> vector<24x64xf32>
    %42 = arith.addf %38, %41 : vector<24x64xf32>
    %43 = vector.extract_strided_slice %9 {offsets = [192, 0], sizes = [24, 32], strides = [1, 1]} : vector<384x32xf32> to vector<24x32xf32>
    %c256 = arith.constant 256 : index
    %c0_27 = arith.constant 0 : index
    %44 = vector.load %arg5[%c256, %c0_27] : memref<512x64xf32, #tpu.memory_space<vmem>>, vector<32x64xf32>
    %cst_28 = arith.constant dense<0.000000e+00> : vector<24x64xf32>
    %45 = tpu.matmul %43, %44, %cst_28 {dimension_numbers = #tpu.dot_dimension_numbers<[1], [0], [0], [1], [0, 0, 1, 1], [], []>} : vector<24x32xf32>, vector<32x64xf32>, vector<24x64xf32> -> vector<24x64xf32>
    %46 = arith.addf %42, %45 : vector<24x64xf32>
    %47 = vector.extract_strided_slice %9 {offsets = [216, 0], sizes = [24, 32], strides = [1, 1]} : vector<384x32xf32> to vector<24x32xf32>
    %c288 = arith.constant 288 : index
    %c0_29 = arith.constant 0 : index
    %48 = vector.load %arg5[%c288, %c0_29] : memref<512x64xf32, #tpu.memory_space<vmem>>, vector<32x64xf32>
    %cst_30 = arith.constant dense<0.000000e+00> : vector<24x64xf32>
    %49 = tpu.matmul %47, %48, %cst_30 {dimension_numbers = #tpu.dot_dimension_numbers<[1], [0], [0], [1], [0, 0, 1, 1], [], []>} : vector<24x32xf32>, vector<32x64xf32>, vector<24x64xf32> -> vector<24x64xf32>
    %50 = arith.addf %46, %49 : vector<24x64xf32>
    %51 = vector.extract_strided_slice %9 {offsets = [240, 0], sizes = [24, 32], strides = [1, 1]} : vector<384x32xf32> to vector<24x32xf32>
    %c320 = arith.constant 320 : index
    %c0_31 = arith.constant 0 : index
    %52 = vector.load %arg5[%c320, %c0_31] : memref<512x64xf32, #tpu.memory_space<vmem>>, vector<32x64xf32>
    %cst_32 = arith.constant dense<0.000000e+00> : vector<24x64xf32>
    %53 = tpu.matmul %51, %52, %cst_32 {dimension_numbers = #tpu.dot_dimension_numbers<[1], [0], [0], [1], [0, 0, 1, 1], [], []>} : vector<24x32xf32>, vector<32x64xf32>, vector<24x64xf32> -> vector<24x64xf32>
    %54 = arith.addf %50, %53 : vector<24x64xf32>
    %55 = vector.extract_strided_slice %9 {offsets = [264, 0], sizes = [24, 32], strides = [1, 1]} : vector<384x32xf32> to vector<24x32xf32>
    %c352 = arith.constant 352 : index
    %c0_33 = arith.constant 0 : index
    %56 = vector.load %arg5[%c352, %c0_33] : memref<512x64xf32, #tpu.memory_space<vmem>>, vector<32x64xf32>
    %cst_34 = arith.constant dense<0.000000e+00> : vector<24x64xf32>
    %57 = tpu.matmul %55, %56, %cst_34 {dimension_numbers = #tpu.dot_dimension_numbers<[1], [0], [0], [1], [0, 0, 1, 1], [], []>} : vector<24x32xf32>, vector<32x64xf32>, vector<24x64xf32> -> vector<24x64xf32>
    %58 = arith.addf %54, %57 : vector<24x64xf32>
    %59 = vector.extract_strided_slice %9 {offsets = [288, 0], sizes = [24, 32], strides = [1, 1]} : vector<384x32xf32> to vector<24x32xf32>
    %c384 = arith.constant 384 : index
    %c0_35 = arith.constant 0 : index
    %60 = vector.load %arg5[%c384, %c0_35] : memref<512x64xf32, #tpu.memory_space<vmem>>, vector<32x64xf32>
    %cst_36 = arith.constant dense<0.000000e+00> : vector<24x64xf32>
    %61 = tpu.matmul %59, %60, %cst_36 {dimension_numbers = #tpu.dot_dimension_numbers<[1], [0], [0], [1], [0, 0, 1, 1], [], []>} : vector<24x32xf32>, vector<32x64xf32>, vector<24x64xf32> -> vector<24x64xf32>
    %62 = arith.addf %58, %61 : vector<24x64xf32>
    %63 = vector.extract_strided_slice %9 {offsets = [312, 0], sizes = [24, 32], strides = [1, 1]} : vector<384x32xf32> to vector<24x32xf32>
    %c416 = arith.constant 416 : index
    %c0_37 = arith.constant 0 : index
    %64 = vector.load %arg5[%c416, %c0_37] : memref<512x64xf32, #tpu.memory_space<vmem>>, vector<32x64xf32>
    %cst_38 = arith.constant dense<0.000000e+00> : vector<24x64xf32>
    %65 = tpu.matmul %63, %64, %cst_38 {dimension_numbers = #tpu.dot_dimension_numbers<[1], [0], [0], [1], [0, 0, 1, 1], [], []>} : vector<24x32xf32>, vector<32x64xf32>, vector<24x64xf32> -> vector<24x64xf32>
    %66 = arith.addf %62, %65 : vector<24x64xf32>
    %67 = vector.extract_strided_slice %9 {offsets = [336, 0], sizes = [24, 32], strides = [1, 1]} : vector<384x32xf32> to vector<24x32xf32>
    %c448 = arith.constant 448 : index
    %c0_39 = arith.constant 0 : index
    %68 = vector.load %arg5[%c448, %c0_39] : memref<512x64xf32, #tpu.memory_space<vmem>>, vector<32x64xf32>
    %cst_40 = arith.constant dense<0.000000e+00> : vector<24x64xf32>
    %69 = tpu.matmul %67, %68, %cst_40 {dimension_numbers = #tpu.dot_dimension_numbers<[1], [0], [0], [1], [0, 0, 1, 1], [], []>} : vector<24x32xf32>, vector<32x64xf32>, vector<24x64xf32> -> vector<24x64xf32>
    %70 = arith.addf %66, %69 : vector<24x64xf32>
    %71 = vector.extract_strided_slice %9 {offsets = [360, 0], sizes = [24, 32], strides = [1, 1]} : vector<384x32xf32> to vector<24x32xf32>
    %c480 = arith.constant 480 : index
    %c0_41 = arith.constant 0 : index
    %72 = vector.load %arg5[%c480, %c0_41] : memref<512x64xf32, #tpu.memory_space<vmem>>, vector<32x64xf32>
    %cst_42 = arith.constant dense<0.000000e+00> : vector<24x64xf32>
    %73 = tpu.matmul %71, %72, %cst_42 {dimension_numbers = #tpu.dot_dimension_numbers<[1], [0], [0], [1], [0, 0, 1, 1], [], []>} : vector<24x32xf32>, vector<32x64xf32>, vector<24x64xf32> -> vector<24x64xf32>
    %74 = arith.addf %70, %73 : vector<24x64xf32>
    %c0_43 = arith.constant 0 : index
    %c0_44 = arith.constant 0 : index
    %75 = vector.load %arg6[%c0_43, %c0_44] : memref<1x64xf32, #tpu.memory_space<vmem>>, vector<1x64xf32>
    %76 = vector.broadcast %75 : vector<1x64xf32> to vector<24x64xf32>
    %77 = arith.addf %74, %76 : vector<24x64xf32>
    %cst_45 = arith.constant 0.000000e+00 : f32
    %78 = vector.broadcast %cst_45 : f32 to vector<24x64xf32>
    %79 = arith.maximumf %77, %78 : vector<24x64xf32>
    %c0_46 = arith.constant 0 : index
    %c0_47 = arith.constant 0 : index
    %80 = vector.load %arg7[%c0_46, %c0_47] : memref<72x24xf32, #tpu.memory_space<vmem>>, vector<72x24xf32>
    %cst_48 = arith.constant dense<0.000000e+00> : vector<72x64xf32>
    %81 = tpu.matmul %80, %79, %cst_48 {dimension_numbers = #tpu.dot_dimension_numbers<[1], [0], [0], [1], [0, 0, 1, 1], [], []>} : vector<72x24xf32>, vector<24x64xf32>, vector<72x64xf32> -> vector<72x64xf32>
    %cst_49 = arith.constant 0.000000e+00 : f32
    %82 = vector.broadcast %cst_49 : f32 to vector<8x64xf32>
    %83 = vector.extract_strided_slice %81 {offsets = [0, 0], sizes = [8, 64], strides = [1, 1]} : vector<72x64xf32> to vector<8x64xf32>
    %c0_50 = arith.constant 0 : index
    %c0_51 = arith.constant 0 : index
    %84 = vector.load %arg8[%c0_50, %c0_51] : memref<576x64xf32, #tpu.memory_space<vmem>>, vector<64x64xf32>
    %cst_52 = arith.constant dense<0.000000e+00> : vector<8x64xf32>
    %85 = tpu.matmul %83, %84, %cst_52 {dimension_numbers = #tpu.dot_dimension_numbers<[1], [0], [0], [1], [0, 0, 1, 1], [], []>} : vector<8x64xf32>, vector<64x64xf32>, vector<8x64xf32> -> vector<8x64xf32>
    %86 = arith.addf %82, %85 : vector<8x64xf32>
    %87 = vector.extract_strided_slice %81 {offsets = [8, 0], sizes = [8, 64], strides = [1, 1]} : vector<72x64xf32> to vector<8x64xf32>
    %c64_53 = arith.constant 64 : index
    %c0_54 = arith.constant 0 : index
    %88 = vector.load %arg8[%c64_53, %c0_54] : memref<576x64xf32, #tpu.memory_space<vmem>>, vector<64x64xf32>
    %cst_55 = arith.constant dense<0.000000e+00> : vector<8x64xf32>
    %89 = tpu.matmul %87, %88, %cst_55 {dimension_numbers = #tpu.dot_dimension_numbers<[1], [0], [0], [1], [0, 0, 1, 1], [], []>} : vector<8x64xf32>, vector<64x64xf32>, vector<8x64xf32> -> vector<8x64xf32>
    %90 = arith.addf %86, %89 : vector<8x64xf32>
    %91 = vector.extract_strided_slice %81 {offsets = [16, 0], sizes = [8, 64], strides = [1, 1]} : vector<72x64xf32> to vector<8x64xf32>
    %c128_56 = arith.constant 128 : index
    %c0_57 = arith.constant 0 : index
    %92 = vector.load %arg8[%c128_56, %c0_57] : memref<576x64xf32, #tpu.memory_space<vmem>>, vector<64x64xf32>
    %cst_58 = arith.constant dense<0.000000e+00> : vector<8x64xf32>
    %93 = tpu.matmul %91, %92, %cst_58 {dimension_numbers = #tpu.dot_dimension_numbers<[1], [0], [0], [1], [0, 0, 1, 1], [], []>} : vector<8x64xf32>, vector<64x64xf32>, vector<8x64xf32> -> vector<8x64xf32>
    %94 = arith.addf %90, %93 : vector<8x64xf32>
    %95 = vector.extract_strided_slice %81 {offsets = [24, 0], sizes = [8, 64], strides = [1, 1]} : vector<72x64xf32> to vector<8x64xf32>
    %c192_59 = arith.constant 192 : index
    %c0_60 = arith.constant 0 : index
    %96 = vector.load %arg8[%c192_59, %c0_60] : memref<576x64xf32, #tpu.memory_space<vmem>>, vector<64x64xf32>
    %cst_61 = arith.constant dense<0.000000e+00> : vector<8x64xf32>
    %97 = tpu.matmul %95, %96, %cst_61 {dimension_numbers = #tpu.dot_dimension_numbers<[1], [0], [0], [1], [0, 0, 1, 1], [], []>} : vector<8x64xf32>, vector<64x64xf32>, vector<8x64xf32> -> vector<8x64xf32>
    %98 = arith.addf %94, %97 : vector<8x64xf32>
    %99 = vector.extract_strided_slice %81 {offsets = [32, 0], sizes = [8, 64], strides = [1, 1]} : vector<72x64xf32> to vector<8x64xf32>
    %c256_62 = arith.constant 256 : index
    %c0_63 = arith.constant 0 : index
    %100 = vector.load %arg8[%c256_62, %c0_63] : memref<576x64xf32, #tpu.memory_space<vmem>>, vector<64x64xf32>
    %cst_64 = arith.constant dense<0.000000e+00> : vector<8x64xf32>
    %101 = tpu.matmul %99, %100, %cst_64 {dimension_numbers = #tpu.dot_dimension_numbers<[1], [0], [0], [1], [0, 0, 1, 1], [], []>} : vector<8x64xf32>, vector<64x64xf32>, vector<8x64xf32> -> vector<8x64xf32>
    %102 = arith.addf %98, %101 : vector<8x64xf32>
    %103 = vector.extract_strided_slice %81 {offsets = [40, 0], sizes = [8, 64], strides = [1, 1]} : vector<72x64xf32> to vector<8x64xf32>
    %c320_65 = arith.constant 320 : index
    %c0_66 = arith.constant 0 : index
    %104 = vector.load %arg8[%c320_65, %c0_66] : memref<576x64xf32, #tpu.memory_space<vmem>>, vector<64x64xf32>
    %cst_67 = arith.constant dense<0.000000e+00> : vector<8x64xf32>
    %105 = tpu.matmul %103, %104, %cst_67 {dimension_numbers = #tpu.dot_dimension_numbers<[1], [0], [0], [1], [0, 0, 1, 1], [], []>} : vector<8x64xf32>, vector<64x64xf32>, vector<8x64xf32> -> vector<8x64xf32>
    %106 = arith.addf %102, %105 : vector<8x64xf32>
    %107 = vector.extract_strided_slice %81 {offsets = [48, 0], sizes = [8, 64], strides = [1, 1]} : vector<72x64xf32> to vector<8x64xf32>
    %c384_68 = arith.constant 384 : index
    %c0_69 = arith.constant 0 : index
    %108 = vector.load %arg8[%c384_68, %c0_69] : memref<576x64xf32, #tpu.memory_space<vmem>>, vector<64x64xf32>
    %cst_70 = arith.constant dense<0.000000e+00> : vector<8x64xf32>
    %109 = tpu.matmul %107, %108, %cst_70 {dimension_numbers = #tpu.dot_dimension_numbers<[1], [0], [0], [1], [0, 0, 1, 1], [], []>} : vector<8x64xf32>, vector<64x64xf32>, vector<8x64xf32> -> vector<8x64xf32>
    %110 = arith.addf %106, %109 : vector<8x64xf32>
    %111 = vector.extract_strided_slice %81 {offsets = [56, 0], sizes = [8, 64], strides = [1, 1]} : vector<72x64xf32> to vector<8x64xf32>
    %c448_71 = arith.constant 448 : index
    %c0_72 = arith.constant 0 : index
    %112 = vector.load %arg8[%c448_71, %c0_72] : memref<576x64xf32, #tpu.memory_space<vmem>>, vector<64x64xf32>
    %cst_73 = arith.constant dense<0.000000e+00> : vector<8x64xf32>
    %113 = tpu.matmul %111, %112, %cst_73 {dimension_numbers = #tpu.dot_dimension_numbers<[1], [0], [0], [1], [0, 0, 1, 1], [], []>} : vector<8x64xf32>, vector<64x64xf32>, vector<8x64xf32> -> vector<8x64xf32>
    %114 = arith.addf %110, %113 : vector<8x64xf32>
    %115 = vector.extract_strided_slice %81 {offsets = [64, 0], sizes = [8, 64], strides = [1, 1]} : vector<72x64xf32> to vector<8x64xf32>
    %c512 = arith.constant 512 : index
    %c0_74 = arith.constant 0 : index
    %116 = vector.load %arg8[%c512, %c0_74] : memref<576x64xf32, #tpu.memory_space<vmem>>, vector<64x64xf32>
    %cst_75 = arith.constant dense<0.000000e+00> : vector<8x64xf32>
    %117 = tpu.matmul %115, %116, %cst_75 {dimension_numbers = #tpu.dot_dimension_numbers<[1], [0], [0], [1], [0, 0, 1, 1], [], []>} : vector<8x64xf32>, vector<64x64xf32>, vector<8x64xf32> -> vector<8x64xf32>
    %118 = arith.addf %114, %117 : vector<8x64xf32>
    %c0_76 = arith.constant 0 : index
    %c0_77 = arith.constant 0 : index
    %119 = vector.load %arg9[%c0_76, %c0_77] : memref<1x64xf32, #tpu.memory_space<vmem>>, vector<1x64xf32>
    %120 = vector.broadcast %119 : vector<1x64xf32> to vector<8x64xf32>
    %121 = arith.addf %118, %120 : vector<8x64xf32>
    %cst_78 = arith.constant 0.000000e+00 : f32
    %122 = vector.broadcast %cst_78 : f32 to vector<8x64xf32>
    %123 = arith.maximumf %121, %122 : vector<8x64xf32>
    %c0_79 = arith.constant 0 : index
    %c0_80 = arith.constant 0 : index
    %124 = vector.load %arg10[%c0_79, %c0_80] : memref<8x8xf32, #tpu.memory_space<vmem>>, vector<8x8xf32>
    %cst_81 = arith.constant dense<0.000000e+00> : vector<8x64xf32>
    %125 = tpu.matmul %124, %123, %cst_81 {dimension_numbers = #tpu.dot_dimension_numbers<[1], [0], [0], [1], [0, 0, 1, 1], [], []>} : vector<8x8xf32>, vector<8x64xf32>, vector<8x64xf32> -> vector<8x64xf32>
    %cst_82 = arith.constant 0.000000e+00 : f32
    %126 = vector.broadcast %cst_82 : f32 to vector<8x512xf32>
    %c0_83 = arith.constant 0 : index
    %c0_84 = arith.constant 0 : index
    %127 = vector.load %arg11[%c0_83, %c0_84] : memref<64x512xf32, #tpu.memory_space<vmem>>, vector<64x512xf32>
    %cst_85 = arith.constant dense<0.000000e+00> : vector<8x512xf32>
    %128 = tpu.matmul %125, %127, %cst_85 {dimension_numbers = #tpu.dot_dimension_numbers<[1], [0], [0], [1], [0, 0, 1, 1], [], []>} : vector<8x64xf32>, vector<64x512xf32>, vector<8x512xf32> -> vector<8x512xf32>
    %129 = arith.addf %126, %128 : vector<8x512xf32>
    %c0_86 = arith.constant 0 : index
    %c0_87 = arith.constant 0 : index
    %130 = vector.load %arg12[%c0_86, %c0_87] : memref<1x512xf32, #tpu.memory_space<vmem>>, vector<1x512xf32>
    %131 = vector.broadcast %130 : vector<1x512xf32> to vector<8x512xf32>
    %132 = arith.addf %129, %131 : vector<8x512xf32>
    %cst_88 = arith.constant 0.000000e+00 : f32
    %133 = vector.broadcast %cst_88 : f32 to vector<8x512xf32>
    %134 = arith.maximumf %132, %133 : vector<8x512xf32>
    %c0_89 = arith.constant 0 : index
    %c0_90 = arith.constant 0 : index
    %135 = vector.load %arg13[%c0_89, %c0_90] : memref<512x128xf32, #tpu.memory_space<vmem>>, vector<512x128xf32>
    %cst_91 = arith.constant dense<0.000000e+00> : vector<8x128xf32>
    %136 = tpu.matmul %134, %135, %cst_91 {dimension_numbers = #tpu.dot_dimension_numbers<[1], [0], [0], [1], [0, 0, 1, 1], [], []>} : vector<8x512xf32>, vector<512x128xf32>, vector<8x128xf32> -> vector<8x128xf32>
    %c0_92 = arith.constant 0 : index
    %c0_93 = arith.constant 0 : index
    %137 = vector.load %arg14[%c0_92, %c0_93] : memref<1x128xf32, #tpu.memory_space<vmem>>, vector<1x128xf32>
    %138 = vector.broadcast %137 : vector<1x128xf32> to vector<8x128xf32>
    %139 = arith.addf %136, %138 : vector<8x128xf32>
    %c0_94 = arith.constant 0 : index
    %c0_95 = arith.constant 0 : index
    %140 = vector.load %arg15[%c0_94, %c0_95] : memref<8x128xf32, #tpu.memory_space<vmem>>, vector<8x128xf32>
    tpu.vector_store %arg15[%c0_94, %c0_95], %139 {strides = array<i32>} : memref<8x128xf32, #tpu.memory_space<vmem>>, vector<8x128xf32>,
    return
  }
  func.func @transform_0(%arg0: i32) -> (i32, i32) {
    %c0_i32 = arith.constant 0 : i32
    %c0_i32_0 = arith.constant 0 : i32
    %c0_i32_1 = arith.constant 0 : i32
    return %c0_i32, %c0_i32_0 : i32, i32
  }
  func.func @transform_1(%arg0: i32) -> (i32, i32) {
    %c0_i32 = arith.constant 0 : i32
    %c0_i32_0 = arith.constant 0 : i32
    %c0_i32_1 = arith.constant 0 : i32
    return %c0_i32, %c0_i32_0 : i32, i32
  }
  func.func @transform_2(%arg0: i32) -> (i32, i32) {
    %c0_i32 = arith.constant 0 : i32
    %c0_i32_0 = arith.constant 0 : i32
    %c0_i32_1 = arith.constant 0 : i32
    return %c0_i32, %c0_i32_0 : i32, i32
  }
  func.func @transform_3(%arg0: i32) -> (i32, i32) {
    %c0_i32 = arith.constant 0 : i32
    %c0_i32_0 = arith.constant 0 : i32
    %c0_i32_1 = arith.constant 0 : i32
    return %c0_i32, %c0_i32_0 : i32, i32
  }
  func.func @transform_4(%arg0: i32) -> (i32, i32) {
    %c0_i32 = arith.constant 0 : i32
    %c0_i32_0 = arith.constant 0 : i32
    %c0_i32_1 = arith.constant 0 : i32
    return %c0_i32, %c0_i32_0 : i32, i32
  }
  func.func @transform_5(%arg0: i32) -> (i32, i32) {
    %c0_i32 = arith.constant 0 : i32
    %c0_i32_0 = arith.constant 0 : i32
    %c0_i32_1 = arith.constant 0 : i32
    return %c0_i32, %c0_i32_0 : i32, i32
  }
  func.func @transform_6(%arg0: i32) -> (i32, i32) {
    %c0_i32 = arith.constant 0 : i32
    %c0_i32_0 = arith.constant 0 : i32
    %c0_i32_1 = arith.constant 0 : i32
    return %c0_i32, %c0_i32_0 : i32, i32
  }
  func.func @transform_7(%arg0: i32) -> (i32, i32) {
    %c0_i32 = arith.constant 0 : i32
    %c0_i32_0 = arith.constant 0 : i32
    %c0_i32_1 = arith.constant 0 : i32
    return %c0_i32, %c0_i32_0 : i32, i32
  }
  func.func @transform_8(%arg0: i32) -> (i32, i32) {
    %c0_i32 = arith.constant 0 : i32
    %c0_i32_0 = arith.constant 0 : i32
    %c0_i32_1 = arith.constant 0 : i32
    return %c0_i32, %c0_i32_0 : i32, i32
  }
  func.func @transform_9(%arg0: i32) -> (i32, i32) {
    %c0_i32 = arith.constant 0 : i32
    %c0_i32_0 = arith.constant 0 : i32
    %c0_i32_1 = arith.constant 0 : i32
    return %c0_i32, %c0_i32_0 : i32, i32
  }
  func.func @transform_10(%arg0: i32) -> (i32, i32) {
    %c0_i32 = arith.constant 0 : i32
    %c0_i32_0 = arith.constant 0 : i32
    %c0_i32_1 = arith.constant 0 : i32
    return %c0_i32, %c0_i32_0 : i32, i32
  }
  func.func @transform_11(%arg0: i32) -> (i32, i32) {
    %c0_i32 = arith.constant 0 : i32
    %c0_i32_0 = arith.constant 0 : i32
    %c0_i32_1 = arith.constant 0 : i32
    return %c0_i32, %c0_i32_0 : i32, i32
  }
  func.func @transform_12(%arg0: i32) -> (i32, i32) {
    %c0_i32 = arith.constant 0 : i32
    %c0_i32_0 = arith.constant 0 : i32
    %c0_i32_1 = arith.constant 0 : i32
    return %c0_i32, %c0_i32_0 : i32, i32
  }
  func.func @transform_13(%arg0: i32) -> (i32, i32) {
    %c0_i32 = arith.constant 0 : i32
    %c0_i32_0 = arith.constant 0 : i32
    %c0_i32_1 = arith.constant 0 : i32
    return %c0_i32, %c0_i32_0 : i32, i32
  }
  func.func @transform_14(%arg0: i32) -> (i32, i32) {
    %c0_i32 = arith.constant 0 : i32
    %c0_i32_0 = arith.constant 0 : i32
    %c0_i32_1 = arith.constant 0 : i32
    return %c0_i32, %c0_i32_0 : i32, i32
  }
}

</mosaic_0001>

<bundles_post_ra>
// kernel: dqn_forward.1
= control target key start
LH: loop header
LB: loop body
LE: loop exit
PB: predicated region body
PF: predicated region fallthrough
CT: control target
= control target key end

     0   :  { %vm4645_vm0 = vmmov 0   ;;  %vm640_vm1 = vcmask 261120   ;;  %vm2185_vm2 = vcmask 195584   ;;  %vm2339_vm3 = vcmask 523264   ;;  %s6247_s1 = inlined_call_operand.vmem [shape: f32[256,32], index: 1, kind: input, shape index: {}]   ;;  %s6248_s0 = inlined_call_operand.vmem [shape: f32[128,256], index: 0, kind: input, shape index: {}]   ;;  %s6249_s3 = inlined_call_operand.vmem [shape: f32[384,128], index: 3, kind: input, shape index: {}]   ;;  %s6250_s2 = inlined_call_operand.vmem [shape: f32[1,32], index: 2, kind: input, shape index: {}]   ;;  %s6251_s4 = inlined_call_operand.vmem [shape: f32[512,64], index: 4, kind: input, shape index: {}]   ;;  %s6252_s7 = inlined_call_operand.vmem [shape: f32[576,64], index: 7, kind: input, shape index: {}]   ;;  %s6253_s5 = inlined_call_operand.vmem [shape: f32[1,64], index: 5, kind: input, shape index: {}]   ;;  %s6254_s6 = inlined_call_operand.vmem [shape: f32[72,24], index: 6, kind: input, shape index: {}]   ;;  %s6255_s10 = inlined_call_operand.vmem [shape: f32[64,512], index: 10, kind: input, shape index: {}]   ;;  %s6256_s8 = inlined_call_operand.vmem [shape: f32[1,64], index: 8, kind: input, shape index: {}]   ;;  %s6257_s9 = inlined_call_operand.vmem [shape: f32[8,8], index: 9, kind: input, shape index: {}]   ;;  %s6258_s12 = inlined_call_operand.vmem [shape: f32[512,128], index: 12, kind: input, shape index: {}]   ;;  %s6259_s11 = inlined_call_operand.vmem [shape: f32[1,512], index: 11, kind: input, shape index: {}]   ;;  %s6260_s13 = inlined_call_operand.vmem [shape: f32[1,128], index: 13, kind: input, shape index: {}]   ;;  %s6261_s14 = inlined_call_operand.vmem [shape: f32[8,128], index: 14, kind: output, shape index: {}]  }
   0x1   :  { %v110_v0 = vld [vmem:[%s6247_s1 + $0xf8] sm:$0xff]  ;;  %v109_v2 = vld [vmem:[%s6247_s1 + $0xf0] sm:$0xff]  ;;  %v108_v4 = vld [vmem:[%s6247_s1 + $0xe8] sm:$0xff]  ;;  %vm3070_vm4 = vcmask 64512  }
   0x2   :  { %v94_v1 = vld [vmem:[%s6247_s1 + $0x78] sm:$0xff]  ;;  %3636 = vmatprep.subr.mxu0 %v110_v0  ;;  %v93_v3 = vld [vmem:[%s6247_s1 + $0x70] sm:$0xff]  ;;  %v92_v5 = vld [vmem:[%s6247_s1 + $0x68] sm:$0xff] }
   0x3   :  { %3637 = vmatpush3.msra.mxu0 %v94_v1  ;;  %v107_v6 = vld [vmem:[%s6247_s1 + $0xe0] sm:$0xff]  ;;  %v106_v8 = vld [vmem:[%s6247_s1 + $0xd8] sm:$0xff]  ;;  %v105_v10 = vld [vmem:[%s6247_s1 + $0xd0] sm:$0xff] }
   0x4   :  { %3638 = vmatprep.subr.mxu0 %v109_v2  ;;  %v91_v7 = vld [vmem:[%s6247_s1 + $0x60] sm:$0xff]  ;;  %v90_v9 = vld [vmem:[%s6247_s1 + $0x58] sm:$0xff]  ;;  %v89_v11 = vld [vmem:[%s6247_s1 + $0x50] sm:$0xff] }
   0x5   :  { %3639 = vmatpush3.msra.mxu0 %v93_v3  ;;  %v104_v12 = vld [vmem:[%s6247_s1 + $0xc8] sm:$0xff]  ;;  %v103_v15 = vld [vmem:[%s6247_s1 + $0xc0] sm:$0xff]  ;;  %v102_v17 = vld [vmem:[%s6247_s1 + $0xb8] sm:$0xff] }
   0x6   :  { %3640 = vmatprep.subr.mxu0 %v108_v4  ;;  %v48_v13 = vld [vmem:[%s6248_s0 + $0x8] sm:$0xff]  ;;  %v87_v16 = vld [vmem:[%s6247_s1 + $0x40] sm:$0xff]  ;;  %v86_v18 = vld [vmem:[%s6247_s1 + $0x38] sm:$0xff] }
   0x7   :  { %3641 = vmatpush3.msra.mxu0 %v92_v5  ;;  %v88_v14 = vld [vmem:[%s6247_s1 + $0x48] sm:$0xff]  ;;  %182 = vmatprep.mubr.f32.mxu0 %v48_v13  ;;  %v101_v19 = vld [vmem:[%s6247_s1 + $0xb0] sm:$0xff]  ;;  %v99_v23 = vld [vmem:[%s6247_s1 + $0xa0] sm:$0xff] }
   0x8   :  { %3642 = vmatprep.subr.mxu0 %v107_v6  ;;  %v85_v20 = vld [vmem:[%s6247_s1 + $0x30] sm:$0xff]  ;;  %v100_v21 = vld [vmem:[%s6247_s1 + $0xa8] sm:$0xff]  ;;  %v83_v24 = vld [vmem:[%s6247_s1 + $0x20] sm:$0xff] }
   0x9   :  { %3643 = vmatpush3.msra.mxu0 %v91_v7  ;;  %v84_v22 = vld [vmem:[%s6247_s1 + $0x28] sm:$0xff]  ;;  %v98_v25 = vld [vmem:[%s6247_s1 + $0x98] sm:$0xff]  ;;  %v97_v27 = vld [vmem:[%s6247_s1 + $0x90] sm:$0xff] }
   0xa   :  { %3644 = vmatprep.subr.mxu0 %v106_v8  ;;  %v82_v26 = vld [vmem:[%s6247_s1 + $0x18] sm:$0xff]  ;;  %v81_v28 = vld [vmem:[%s6247_s1 + $0x10] sm:$0xff]  ;;  %v96_v29 = vld [vmem:[%s6247_s1 + $0x88] sm:$0xff] }
   0xb   :  { %3645 = vmatpush3.msra.mxu0 %v90_v9  ;;  %v80_v30 = vld [vmem:[%s6247_s1 + $0x8] sm:$0xff]  ;;  %v95_v31 = vld [vmem:[%s6247_s1 + $0x80] sm:$0xff]  ;;  %v50_v34 = vld [vmem:[%s6248_s0 + $0x18] sm:$0xff] }
   0xc   :  { %3646 = vmatprep.subr.mxu0 %v105_v10  ;;  %v79_v32 = vld [vmem:[%s6247_s1] sm:$0xff]  ;;  %v49_v35 = vld [vmem:[%s6248_s0 + $0x10] sm:$0xff]  ;;  %v52_v36 = vld [vmem:[%s6248_s0 + $0x28] sm:$0xff] }
   0xd   :  { %3647 = vmatpush3.msra.mxu0 %v89_v11  ;;  %v47_v33 = vld [vmem:[%s6248_s0] sm:$0xff]  ;;  %v54_v38 = vld [vmem:[%s6248_s0 + $0x38] sm:$0xff]  ;;  %v53_v39 = vld [vmem:[%s6248_s0 + $0x30] sm:$0xff] }
   0xe   :  { %3648 = vmatprep.subr.mxu0 %v104_v12  ;;  %v51_v37 = vld [vmem:[%s6248_s0 + $0x20] sm:$0xff]  ;;  %v56_v40 = vld [vmem:[%s6248_s0 + $0x48] sm:$0xff]  ;;  %v58_v42 = vld [vmem:[%s6248_s0 + $0x58] sm:$0xff] }
   0xf   :  { %3649 = vmatpush3.msra.mxu0 %v88_v14  ;;  %v55_v41 = vld [vmem:[%s6248_s0 + $0x40] sm:$0xff]  ;;  %v57_v43 = vld [vmem:[%s6248_s0 + $0x50] sm:$0xff]  ;;  %v60_v44 = vld [vmem:[%s6248_s0 + $0x68] sm:$0xff] }
  0x10   :  { %3650 = vmatprep.subr.mxu0 %v103_v15  ;;  %v59_v45 = vld [vmem:[%s6248_s0 + $0x60] sm:$0xff]  ;;  %v62_v46 = vld [vmem:[%s6248_s0 + $0x78] sm:$0xff]  ;;  %v61_v47 = vld [vmem:[%s6248_s0 + $0x70] sm:$0xff] }
  0x11   :  { %3651 = vmatpush3.msra.mxu0 %v87_v16  ;;  %v64_v48 = vld [vmem:[%s6248_s0 + $0x88] sm:$0xff]  ;;  %v63_v49 = vld [vmem:[%s6248_s0 + $0x80] sm:$0xff]  ;;  %v66_v50 = vld [vmem:[%s6248_s0 + $0x98] sm:$0xff] }
  0x12   :  { %3652 = vmatprep.subr.mxu0 %v102_v17  ;;  %v65_v51 = vld [vmem:[%s6248_s0 + $0x90] sm:$0xff]  ;;  %v68_v52 = vld [vmem:[%s6248_s0 + $0xa8] sm:$0xff]  ;;  %v67_v53 = vld [vmem:[%s6248_s0 + $0xa0] sm:$0xff] }
  0x13   :  { %3653 = vmatpush3.msra.mxu0 %v86_v18  ;;  %v70_v54 = vld [vmem:[%s6248_s0 + $0xb8] sm:$0xff]  ;;  %v69_v55 = vld [vmem:[%s6248_s0 + $0xb0] sm:$0xff]  ;;  %v72_v56 = vld [vmem:[%s6248_s0 + $0xc8] sm:$0xff] }
  0x14   :  { %3654 = vmatprep.subr.mxu0 %v101_v19  ;;  %v71_v57 = vld [vmem:[%s6248_s0 + $0xc0] sm:$0xff]  ;;  %v74_v58 = vld [vmem:[%s6248_s0 + $0xd8] sm:$0xff]  ;;  %v73_v59 = vld [vmem:[%s6248_s0 + $0xd0] sm:$0xff] }
  0x15   :  { %3655 = vmatpush3.msra.mxu0 %v85_v20  ;;  %v76_v60 = vld [vmem:[%s6248_s0 + $0xe8] sm:$0xff]  ;;  %v75_v61 = vld [vmem:[%s6248_s0 + $0xe0] sm:$0xff]  ;;  %v78_v62 = vld [vmem:[%s6248_s0 + $0xf8] sm:$0xff] }
  0x16   :  { %3656 = vmatprep.subr.mxu0 %v100_v21  ;;  %v77_v63 = vld [vmem:[%s6248_s0 + $0xf0] sm:$0xff]  ;;  %v279_v0 = vld [vmem:[%s6249_s3] sm:$0xff] }
  0x17   :  { %3657 = vmatpush3.msra.mxu0 %v84_v22  ;;  %4089 = vmatprep.mubr.f32.mxu1 %v279_v0 }
  0x18   :  { %3658 = vmatprep.subr.mxu0 %v99_v23 }
  0x19   :  { %3659 = vmatpush3.msra.mxu0 %v83_v24 }
  0x1a   :  { %3660 = vmatprep.subr.mxu0 %v98_v25 }
  0x1b   :  { %3661 = vmatpush3.msra.mxu0 %v82_v26 }
  0x1c   :  { %3662 = vmatprep.subr.mxu0 %v97_v27 }
  0x1d   :  { %3663 = vmatpush3.msra.mxu0 %v81_v28 }
  0x1e   :  { %3664 = vmatprep.subr.mxu0 %v96_v29 }
  0x1f   :  { %3665 = vmatpush3.msra.mxu0 %v80_v30 }
  0x20   :  { %3666 = vmatprep.subr.mxu0 %v95_v31 }
  0x21   :  { %3667 = vmatpush3.msra.mxu0 %v79_v32 }
  0x22   :  { %183 = vmatmul.mubr.f32.vlgmr.msra.gmra.mxu0 %v47_v33 }
  0x23   :  { %187 = vmatprep.mubr.f32.mxu0 %v50_v34 }
  0x26   :  { %188 = vmatmul.mubr.f32.gmra.mxu0 %v49_v35 }
  0x27   :  { %192 = vmatprep.mubr.f32.mxu0 %v52_v36 }
  0x2a   :  { %193 = vmatmul.mubr.f32.gmra.mxu0 %v51_v37 }
  0x2b   :  { %197 = vmatprep.mubr.f32.mxu0 %v54_v38 }
  0x2e   :  { %198 = vmatmul.mubr.f32.gmra.mxu0 %v53_v39  ;;  %v4941_v39 = vld [vmem:[%s6250_s2] ss:$0 sm:$0xff] }
  0x2f   :  { %202 = vmatprep.mubr.f32.mxu0 %v56_v40 }
  0x32   :  { %203 = vmatmul.mubr.f32.gmra.mxu0 %v55_v41 }
  0x33   :  { %207 = vmatprep.mubr.f32.mxu0 %v58_v42 }
  0x36   :  { %208 = vmatmul.mubr.f32.gmra.mxu0 %v57_v43  ;;  %v4644_v43 = vmov 0.0  }
  0x37   :  { %212 = vmatprep.mubr.f32.mxu0 %v60_v44  ;;  %4161 = vmatprep.subr.mxu0 %v4644_v43  ;;  %v639_v44 = vld [vmem:[%s6251_s4 + $0x38] sm:$0xff] }
  0x38   :  { %4162 = vmatpush3.msra.mxu0 %v639_v44  ;;  %v297_v44 = vld [vmem:[%s6249_s3 + $0x90] sm:$0xff] }
  0x39   :  { %4163 = vmatprep.subr.mxu0 %v4644_v43 }
  0x3a   :  { %213 = vmatmul.mubr.f32.gmra.mxu0 %v59_v45  ;;  %v638_v45 = vld [vmem:[%s6251_s4 + $0x30] sm:$0xff] }
  0x3b   :  { %217 = vmatprep.mubr.f32.mxu0 %v62_v46  ;;  %4164 = vmatpush3.msra.mxu0 %v638_v45  ;;  %v298_v45 = vld [vmem:[%s6249_s3 + $0x98] sm:$0xff] }
  0x3c   :  { %4165 = vmatprep.subr.mxu0 %v4644_v43 }
  0x3e   :  { %218 = vmatmul.mubr.f32.gmra.mxu0 %v61_v47 }
  0x3f   :  { %222 = vmatprep.mubr.f32.mxu0 %v64_v48 }
  0x42   :  { %223 = vmatmul.mubr.f32.gmra.mxu0 %v63_v49  ;;  %v637_v49 = vld [vmem:[%s6251_s4 + $0x28] sm:$0xff] }
  0x43   :  { %227 = vmatprep.mubr.f32.mxu0 %v66_v50  ;;  %4166 = vmatpush3.msra.mxu0 %v637_v49  ;;  %v302_v49 = vld [vmem:[%s6249_s3 + $0xb8] sm:$0xff] }
  0x44   :  { %4167 = vmatprep.subr.mxu0 %v4644_v43 }
  0x46   :  { %228 = vmatmul.mubr.f32.gmra.mxu0 %v65_v51 }
  0x47   :  { %232 = vmatprep.mubr.f32.mxu0 %v68_v52 }
  0x4a   :  { %233 = vmatmul.mubr.f32.gmra.mxu0 %v67_v53  ;;  %v636_v53 = vld [vmem:[%s6251_s4 + $0x20] sm:$0xff] }
  0x4b   :  { %237 = vmatprep.mubr.f32.mxu0 %v70_v54  ;;  %4168 = vmatpush3.msra.mxu0 %v636_v53  ;;  %v306_v53 = vld [vmem:[%s6249_s3 + $0xd8] sm:$0xff] }
  0x4c   :  { %4178 = vmatprep.subr.mxu0 %v4644_v43 }
  0x4e   :  { %238 = vmatmul.mubr.f32.gmra.mxu0 %v69_v55 }
  0x4f   :  { %242 = vmatprep.mubr.f32.mxu0 %v72_v56 }
  0x52   :  { %243 = vmatmul.mubr.f32.gmra.mxu0 %v71_v57 }
  0x53   :  { %247 = vmatprep.mubr.f32.mxu0 %v74_v58 }
  0x56   :  { %248 = vmatmul.mubr.f32.gmra.mxu0 %v73_v59 }
  0x57   :  { %252 = vmatprep.mubr.f32.mxu0 %v76_v60 }
  0x5a   :  { %253 = vmatmul.mubr.f32.gmra.mxu0 %v75_v61 }
  0x5b   :  { %257 = vmatprep.mubr.f32.mxu0 %v78_v62 }
  0x5e   :  { %258 = vmatmul.mubr.f32.gmra.mxu0 %v77_v63 }
  0x5f   :  { %4169 = vmatprep.mubr.msk.f32.mxu0 %vm4645_vm0, %v4644_v43 }
  0xe2   :  { %v4916_v1 = vpop.f32.mrf.mxu0 }
  0xe4   :  { %v4918_v2 = vpop.f32.mrf.mxu0 }
  0xe6   :  { %v4920_v3 = vpop.f32.mrf.mxu0 }
  0xe8   :  { %v4922_v4 = vpop.f32.mrf.mxu0 }
  0xea   :  { %v3674_v5 = vpop.f32.mrf.mxu0 }
  0xec   :  { %v3675_v6 = vpop.f32.mrf.mxu0 }
  0xed   :  { %v4924_v7 = vadd.f32 %v3675_v6, %v3674_v5 }
  0xee   :  { %v3677_v8 = vpop.f32.mrf.mxu0 }
  0xf0   :  { %v3678_v9 = vpop.f32.mrf.mxu0 }
  0xf1   :  { %v4926_v10 = vadd.f32 %v3678_v9, %v3677_v8 }
  0xf2   :  { %v3680_v11 = vpop.f32.mrf.mxu0 }
  0xf4   :  { %v3681_v12 = vpop.f32.mrf.mxu0 }
  0xf5   :  { %v4928_v13 = vadd.f32 %v3681_v12, %v3680_v11 }
  0xf6   :  { %v4930_v14 = vpop.f32.mrf.mxu0 }
  0xf8   :  { %v4932_v15 = vpop.f32.mrf.mxu0 }
  0xf9   :  { %v3685_v6 = vadd.f32 %v4932_v15, %v4930_v14  ;;  %v3673_v14 = vadd.f32 %v4922_v4, %v4920_v3  ;;  %v200_v15 = vadd.f32 %v4926_v10, %v4941_v39 }
  0xfa   :  { %v4934_v16 = vpop.f32.mrf.mxu0 }
  0xfc   :  { %v4936_v17 = vpop.f32.mrf.mxu0 }
  0xfd   :  { %v3688_v63 = vadd.f32 %v4936_v17, %v4934_v16  ;;  %v210_v16 = vadd.f32 %v3685_v6, %v4941_v39  ;;  %v319_v6 = vld [vmem:[%s6249_s3 + $0x140] sm:$0xff] }
  0xfe   :  { %v3689_v18 = vpop.f32.mrf.mxu0 }
  0xff   :  { %v215_v11 = vadd.f32 %v3688_v63, %v4941_v39  ;;  %v316_v63 = vld [vmem:[%s6249_s3 + $0x128] sm:$0xff] }
 0x100   :  { %v3690_v19 = vpop.f32.mrf.mxu0 }
 0x101   :  { %v3691_v60 = vadd.f32 %v3690_v19, %v3689_v18  ;;  %v205_v18 = vadd.f32 %v4928_v13, %v4941_v39  ;;  %v269_v19 = vmax.f32 %v215_v11, 0.0  ;;  %v190_v13 = vadd.f32 %v3673_v14, %v4941_v39  ;;  %v915_v11 = vld [vmem:[%s6251_s4 + $0x60] sm:$0xff] }
 0x102   :  { %v3692_v20 = vpop.f32.mrf.mxu0 }
 0x103   :  { %v220_v8 = vadd.f32 %v3691_v60, %v4941_v39  ;;  %v264_v10 = vmax.f32 %v190_v13, 0.0  ;;  %v313_v60 = vld [vmem:[%s6249_s3 + $0x110] sm:$0xff]  ;;  %v633_v13 = vld [vmem:[%s6251_s4 + $0x8] sm:$0xff] }
 0x104   :  { %v3693_v21 = vpop.f32.mrf.mxu0 }
 0x105   :  { %v3694_v57 = vadd.f32 %v3693_v21, %v3692_v20  ;;  %v270_v17 = vmax.f32 %v220_v8, 0.0  ;;  %v268_v20 = vmax.f32 %v210_v16, 0.0  ;;  %v3670_v21 = vadd.f32 %v4918_v2, %v4916_v1  ;;  %v280_v2 = vld [vmem:[%s6249_s3 + $0x8] sm:$0xff]  ;;  %v323_v16 = vld [vmem:[%s6249_s3 + $0x160] sm:$0xff] }
 0x106   :  { %v3695_v22 = vpop.f32.mrf.mxu0  ;;  %v320_v8 = vld [vmem:[%s6249_s3 + $0x148] sm:$0xff] }
 0x107   :  { %v225_v0 = vadd.f32 %v3694_v57, %v4941_v39  ;;  %v185_v3 = vadd.f32 %v3670_v21, %v4941_v39  ;;  %v310_v57 = vld [vmem:[%s6249_s3 + $0xf8] sm:$0xff] }
 0x108   :  { %v3696_v23 = vpop.f32.mrf.mxu0 }
 0x109   :  { %v3697_v54 = vadd.f32 %v3696_v23, %v3695_v22  ;;  %v271_v12 = vmax.f32 %v225_v0, 0.0  ;;  %v195_v22 = vadd.f32 %v4924_v7, %v4941_v39  ;;  %v267_v23 = vmax.f32 %v205_v18, 0.0  ;;  %v281_v7 = vld [vmem:[%s6249_s3 + $0x10] sm:$0xff] }
 0x10a   :  { %v3698_v24 = vpop.f32.mrf.mxu0  ;;  %v263_v1 = vmax.f32 %v185_v3, 0.0  ;;  %v317_v0 = vld [vmem:[%s6249_s3 + $0x130] sm:$0xff]  ;;  %v632_v3 = vld [vmem:[%s6251_s4] sm:$0xff] }
 0x10b   :  { %v230_v61 = vadd.f32 %v3697_v54, %v4941_v39  ;;  %v265_v4 = vmax.f32 %v195_v22, 0.0  ;;  %v307_v54 = vld [vmem:[%s6249_s3 + $0xe0] sm:$0xff]  ;;  %v325_v18 = vld [vmem:[%s6249_s3 + $0x170] sm:$0xff] }
 0x10c   :  { %v3699_v25 = vpop.f32.mrf.mxu0  ;;  %v634_v22 = vld [vmem:[%s6251_s4 + $0x10] sm:$0xff] }
 0x10d   :  { %v3700_v50 = vadd.f32 %v3699_v25, %v3698_v24  ;;  %v272_v9 = vmax.f32 %v230_v61, 0.0  ;;  %v266_v24 = vmax.f32 %v200_v15, 0.0  ;;  %v918_v25 = vld [vmem:[%s6251_s4 + $0x78] sm:$0xff] }
 0x10e   :  { %v3701_v26 = vpop.f32.mrf.mxu0  ;;  %v314_v61 = vld [vmem:[%s6249_s3 + $0x118] sm:$0xff] }
 0x10f   :  { %v235_v58 = vadd.f32 %v3700_v50, %v4941_v39  ;;  %v303_v50 = vld [vmem:[%s6249_s3 + $0xc0] sm:$0xff] }
 0x110   :  { %v3702_v27 = vpop.f32.mrf.mxu0 }
 0x111   :  { %v3703_v46 = vadd.f32 %v3702_v27, %v3701_v26  ;;  %v273_v5 = vmax.f32 %v235_v58, 0.0  ;;  %v917_v26 = vld [vmem:[%s6251_s4 + $0x70] sm:$0xff]  ;;  %v282_v27 = vld [vmem:[%s6249_s3 + $0x18] sm:$0xff]  ;;  %v311_v58 = vld [vmem:[%s6249_s3 + $0x100] sm:$0xff] }
 0x112   :  { %v3704_v28 = vpop.f32.mrf.mxu0 }
 0x113   :  { %v240_v55 = vadd.f32 %v3703_v46, %v4941_v39  ;;  %v299_v46 = vld [vmem:[%s6249_s3 + $0xa0] sm:$0xff] }
 0x114   :  { %v3705_v29 = vpop.f32.mrf.mxu0 }
 0x115   :  { %v3706_v40 = vadd.f32 %v3705_v29, %v3704_v28  ;;  %v274_v62 = vmax.f32 %v240_v55, 0.0  ;;  %v283_v28 = vld [vmem:[%s6249_s3 + $0x20] sm:$0xff]  ;;  %v916_v29 = vld [vmem:[%s6251_s4 + $0x68] sm:$0xff] }
 0x116   :  { %v3707_v30 = vpop.f32.mrf.mxu0  ;;  %v308_v55 = vld [vmem:[%s6249_s3 + $0xe8] sm:$0xff] }
 0x117   :  { %v245_v51 = vadd.f32 %v3706_v40, %v4941_v39  ;;  %v294_v40 = vld [vmem:[%s6249_s3 + $0x78] sm:$0xff] }
 0x118   :  { %v3708_v31 = vpop.f32.mrf.mxu0 }
 0x119   :  { %v3709_v37 = vadd.f32 %v3708_v31, %v3707_v30  ;;  %v275_v59 = vmax.f32 %v245_v51, 0.0  ;;  %v284_v30 = vld [vmem:[%s6249_s3 + $0x28] sm:$0xff]  ;;  %v285_v31 = vld [vmem:[%s6249_s3 + $0x30] sm:$0xff] }
 0x11a   :  { %v3710_v32 = vpop.f32.mrf.mxu0  ;;  %v304_v51 = vld [vmem:[%s6249_s3 + $0xc8] sm:$0xff] }
 0x11b   :  { %v250_v47 = vadd.f32 %v3709_v37, %v4941_v39  ;;  %v291_v37 = vld [vmem:[%s6249_s3 + $0x60] sm:$0xff] }
 0x11c   :  { %v3711_v33 = vpop.f32.mrf.mxu0 }
 0x11d   :  { %v3712_v35 = vadd.f32 %v3711_v33, %v3710_v32  ;;  %v276_v56 = vmax.f32 %v250_v47, 0.0  ;;  %v286_v32 = vld [vmem:[%s6249_s3 + $0x38] sm:$0xff]  ;;  %v287_v33 = vld [vmem:[%s6249_s3 + $0x40] sm:$0xff]  ;;  %v300_v47 = vld [vmem:[%s6249_s3 + $0xa8] sm:$0xff] }
 0x11e   :  { %v3713_v34 = vpop.f32.mrf.mxu0 }
 0x11f   :  { %v255_v41 = vadd.f32 %v3712_v35, %v4941_v39  ;;  %v289_v35 = vld [vmem:[%s6249_s3 + $0x50] sm:$0xff] }
 0x120   :  { %v3714_v36 = vpop.f32.mrf.mxu0 }
 0x121   :  { %v3715_v38 = vadd.f32 %v3714_v36, %v3713_v34  ;;  %v277_v52 = vmax.f32 %v255_v41, 0.0  ;;  %v288_v34 = vld [vmem:[%s6249_s3 + $0x48] sm:$0xff]  ;;  %v290_v36 = vld [vmem:[%s6249_s3 + $0x58] sm:$0xff]  ;;  %v295_v41 = vld [vmem:[%s6249_s3 + $0x80] sm:$0xff] }
 0x123   :  { %v260_v42 = vadd.f32 %v3715_v38, %v4941_v39  ;;  %v292_v38 = vld [vmem:[%s6249_s3 + $0x68] sm:$0xff]  ;;  %v293_v39 = vld [vmem:[%s6249_s3 + $0x70] sm:$0xff] }
 0x125   :  { %v278_v48 = vmax.f32 %v260_v42, 0.0  ;;  %v296_v42 = vld [vmem:[%s6249_s3 + $0x88] sm:$0xff] }
 0x127   :  { %4057 = vmatprep.subr.mxu1 %v278_v48 }
 0x128   :  { %4058 = vmatpush3.msra.mxu1 %v278_v48  ;;  %v301_v48 = vld [vmem:[%s6249_s3 + $0xb0] sm:$0xff] }
 0x129   :  { %4059 = vmatprep.subr.mxu1 %v277_v52 }
 0x12a   :  { %4060 = vmatpush3.msra.mxu1 %v277_v52  ;;  %v305_v52 = vld [vmem:[%s6249_s3 + $0xd0] sm:$0xff] }
 0x12b   :  { %4061 = vmatprep.subr.mxu1 %v276_v56 }
 0x12c   :  { %4062 = vmatpush3.msra.mxu1 %v276_v56  ;;  %v309_v56 = vld [vmem:[%s6249_s3 + $0xf0] sm:$0xff] }
 0x12d   :  { %4063 = vmatprep.subr.mxu1 %v275_v59 }
 0x12e   :  { %4064 = vmatpush3.msra.mxu1 %v275_v59  ;;  %v312_v59 = vld [vmem:[%s6249_s3 + $0x108] sm:$0xff] }
 0x12f   :  { %4065 = vmatprep.subr.mxu1 %v274_v62 }
 0x130   :  { %4066 = vmatpush3.msra.mxu1 %v274_v62  ;;  %v315_v62 = vld [vmem:[%s6249_s3 + $0x120] sm:$0xff] }
 0x131   :  { %4067 = vmatprep.subr.mxu1 %v273_v5 }
 0x132   :  { %4068 = vmatpush3.msra.mxu1 %v273_v5  ;;  %v318_v5 = vld [vmem:[%s6249_s3 + $0x138] sm:$0xff] }
 0x133   :  { %4069 = vmatprep.subr.mxu1 %v272_v9 }
 0x134   :  { %4070 = vmatpush3.msra.mxu1 %v272_v9  ;;  %v321_v9 = vld [vmem:[%s6249_s3 + $0x150] sm:$0xff] }
 0x135   :  { %4071 = vmatprep.subr.mxu1 %v271_v12 }
 0x136   :  { %4072 = vmatpush3.msra.mxu1 %v271_v12  ;;  %v322_v12 = vld [vmem:[%s6249_s3 + $0x158] sm:$0xff] }
 0x137   :  { %4073 = vmatprep.subr.mxu1 %v270_v17 }
 0x138   :  { %4074 = vmatpush3.msra.mxu1 %v270_v17  ;;  %v324_v17 = vld [vmem:[%s6249_s3 + $0x168] sm:$0xff] }
 0x139   :  { %4075 = vmatprep.subr.mxu1 %v269_v19 }
 0x13a   :  { %4076 = vmatpush3.msra.mxu1 %v269_v19  ;;  %v326_v19 = vld [vmem:[%s6249_s3 + $0x178] sm:$0xff] }
 0x13b   :  { %4077 = vmatprep.subr.mxu1 %v268_v20 }
 0x13c   :  { %4078 = vmatpush3.msra.mxu1 %v268_v20  ;;  %v635_v20 = vld [vmem:[%s6251_s4 + $0x18] sm:$0xff] }
 0x13d   :  { %4079 = vmatprep.subr.mxu1 %v267_v23 }
 0x13e   :  { %4080 = vmatpush3.msra.mxu1 %v267_v23 }
 0x13f   :  { %4081 = vmatprep.subr.mxu1 %v266_v24 }
 0x140   :  { %4082 = vmatpush3.msra.mxu1 %v266_v24 }
 0x141   :  { %4083 = vmatprep.subr.mxu1 %v265_v4 }
 0x142   :  { %4084 = vmatpush3.msra.mxu1 %v265_v4 }
 0x143   :  { %4085 = vmatprep.subr.mxu1 %v264_v10 }
 0x144   :  { %4086 = vmatpush3.msra.mxu1 %v264_v10 }
 0x145   :  { %4087 = vmatprep.subr.mxu1 %v263_v1 }
 0x146   :  { %4088 = vmatpush3.msra.mxu1 %v263_v1 }
 0x147   :  { %4090 = vmatmul.mubr.f32.vlgmr.msra.gmra.mxu1 %v280_v2  ;;  %4212 = vmatprep.subr.mxu1 %v4644_v43  ;;  %v1110_v2 = vld [vmem:[%s6251_s4 + $0xb8] sm:$0xff] }
 0x148   :  { %4092 = vmatprep.mubr.f32.mxu1 %v281_v7  ;;  %4213 = vmatpush3.msra.mxu1 %v918_v25  ;;  %v822_v25 = vld [vmem:[%s6251_s4 + $0x58] sm:$0xff] }
 0x149   :  { %4214 = vmatprep.subr.mxu1 %v4644_v43 }
 0x14a   :  { %4215 = vmatpush3.msra.mxu1 %v917_v26 }
 0x14b   :  { %4093 = vmatmul.mubr.f32.gmra.mxu1 %v282_v27  ;;  %4216 = vmatprep.subr.mxu1 %v4644_v43  ;;  %v1109_v27 = vld [vmem:[%s6251_s4 + $0xb0] sm:$0xff] }
 0x14c   :  { %4095 = vmatprep.mubr.f32.mxu1 %v283_v28  ;;  %4217 = vmatpush3.msra.mxu1 %v916_v29  ;;  %v821_v28 = vld [vmem:[%s6251_s4 + $0x50] sm:$0xff] }
 0x14d   :  { %4218 = vmatprep.subr.mxu1 %v4644_v43 }
 0x14e   :  { %4219 = vmatpush3.msra.mxu1 %v915_v11  ;;  %v1398_v11 = vld [vmem:[%s6251_s4 + $0x118] sm:$0xff] }
 0x14f   :  { %4096 = vmatmul.mubr.f32.gmra.mxu1 %v284_v30  ;;  %4246 = vmatprep.subr.mxu1 %v4644_v43  ;;  %v820_v30 = vld [vmem:[%s6251_s4 + $0x48] sm:$0xff] }
 0x150   :  { %4098 = vmatprep.mubr.f32.mxu1 %v285_v31 }
 0x153   :  { %4099 = vmatmul.mubr.f32.gmra.mxu1 %v286_v32  ;;  %v819_v32 = vld [vmem:[%s6251_s4 + $0x40] sm:$0xff] }
 0x154   :  { %4101 = vmatprep.mubr.f32.mxu1 %v287_v33 }
 0x157   :  { %4102 = vmatmul.mubr.f32.gmra.mxu1 %v288_v34  ;;  %v1108_v34 = vld [vmem:[%s6251_s4 + $0xa8] sm:$0xff] }
 0x158   :  { %4104 = vmatprep.mubr.f32.mxu1 %v289_v35 }
 0x15b   :  { %4105 = vmatmul.mubr.f32.gmra.mxu1 %v290_v36  ;;  %v1107_v36 = vld [vmem:[%s6251_s4 + $0xa0] sm:$0xff] }
 0x15c   :  { %4107 = vmatprep.mubr.f32.mxu1 %v291_v37 }
 0x15f   :  { %4108 = vmatmul.mubr.f32.gmra.mxu1 %v292_v38  ;;  %v1014_v38 = vld [vmem:[%s6251_s4 + $0x98] sm:$0xff] }
 0x160   :  { %4110 = vmatprep.mubr.f32.mxu1 %v293_v39 }
 0x163   :  { %4111 = vmatmul.mubr.f32.gmra.mxu1 %v294_v40  ;;  %v1013_v40 = vld [vmem:[%s6251_s4 + $0x90] sm:$0xff] }
 0x164   :  { %4113 = vmatprep.mubr.f32.mxu1 %v295_v41 }
 0x167   :  { %4114 = vmatmul.mubr.f32.gmra.mxu1 %v296_v42  ;;  %v1012_v42 = vld [vmem:[%s6251_s4 + $0x88] sm:$0xff] }
 0x168   :  { %4116 = vmatprep.mubr.f32.mxu1 %v297_v44 }
 0x16b   :  { %4117 = vmatmul.mubr.f32.gmra.mxu1 %v298_v45  ;;  %v1011_v45 = vld [vmem:[%s6251_s4 + $0x80] sm:$0xff] }
 0x16c   :  { %4119 = vmatprep.mubr.f32.mxu1 %v299_v46  ;;  %v1302_v46 = vld [vmem:[%s6251_s4 + $0xf8] sm:$0xff] }
 0x16f   :  { %4120 = vmatmul.mubr.f32.gmra.mxu1 %v300_v47 }
 0x170   :  { %4122 = vmatprep.mubr.f32.mxu1 %v301_v48 }
 0x173   :  { %4123 = vmatmul.mubr.f32.gmra.mxu1 %v302_v49  ;;  %v1301_v49 = vld [vmem:[%s6251_s4 + $0xf0] sm:$0xff] }
 0x174   :  { %4125 = vmatprep.mubr.f32.mxu1 %v303_v50 }
 0x177   :  { %4126 = vmatmul.mubr.f32.gmra.mxu1 %v304_v51  ;;  %v1300_v51 = vld [vmem:[%s6251_s4 + $0xe8] sm:$0xff] }
 0x178   :  { %4128 = vmatprep.mubr.f32.mxu1 %v305_v52 }
 0x17b   :  { %4129 = vmatmul.mubr.f32.gmra.mxu1 %v306_v53  ;;  %v1206_v53 = vld [vmem:[%s6251_s4 + $0xd8] sm:$0xff] }
 0x17c   :  { %4131 = vmatprep.mubr.f32.mxu1 %v307_v54  ;;  %v1299_v54 = vld [vmem:[%s6251_s4 + $0xe0] sm:$0xff] }
 0x17f   :  { %4132 = vmatmul.mubr.f32.gmra.mxu1 %v308_v55 }
 0x180   :  { %4134 = vmatprep.mubr.f32.mxu1 %v309_v56  ;;  %v1205_v56 = vld [vmem:[%s6251_s4 + $0xd0] sm:$0xff] }
 0x183   :  { %4135 = vmatmul.mubr.f32.gmra.mxu1 %v310_v57 }
 0x184   :  { %4137 = vmatprep.mubr.f32.mxu1 %v311_v58  ;;  %v1204_v58 = vld [vmem:[%s6251_s4 + $0xc8] sm:$0xff] }
 0x187   :  { %4138 = vmatmul.mubr.f32.gmra.mxu1 %v312_v59 }
 0x188   :  { %4140 = vmatprep.mubr.f32.mxu1 %v313_v60  ;;  %v1203_v60 = vld [vmem:[%s6251_s4 + $0xc0] sm:$0xff] }
 0x18b   :  { %4141 = vmatmul.mubr.f32.gmra.mxu1 %v314_v61  ;;  %v1494_v61 = vld [vmem:[%s6251_s4 + $0x138] sm:$0xff] }
 0x18c   :  { %4143 = vmatprep.mubr.f32.mxu1 %v315_v62 }
 0x18f   :  { %4144 = vmatmul.mubr.f32.gmra.mxu1 %v316_v63  ;;  %v1493_v63 = vld [vmem:[%s6251_s4 + $0x130] sm:$0xff] }
 0x190   :  { %4146 = vmatprep.mubr.f32.mxu1 %v317_v0 }
 0x193   :  { %4147 = vmatmul.mubr.f32.gmra.mxu1 %v318_v5  ;;  %v1492_v5 = vld [vmem:[%s6251_s4 + $0x128] sm:$0xff] }
 0x194   :  { %4149 = vmatprep.mubr.f32.mxu1 %v319_v6 }
 0x197   :  { %4150 = vmatmul.mubr.f32.gmra.mxu1 %v320_v8  ;;  %v1491_v8 = vld [vmem:[%s6251_s4 + $0x120] sm:$0xff] }
 0x198   :  { %4152 = vmatprep.mubr.f32.mxu1 %v321_v9 }
 0x19b   :  { %4153 = vmatmul.mubr.f32.gmra.mxu1 %v322_v12 }
 0x19c   :  { %4155 = vmatprep.mubr.f32.mxu1 %v323_v16  ;;  %v1397_v16 = vld [vmem:[%s6251_s4 + $0x110] sm:$0xff] }
 0x19f   :  { %4156 = vmatmul.mubr.f32.gmra.mxu1 %v324_v17 }
 0x1a0   :  { %4158 = vmatprep.mubr.f32.mxu1 %v325_v18  ;;  %v1396_v18 = vld [vmem:[%s6251_s4 + $0x108] sm:$0xff] }
 0x1a3   :  { %4159 = vmatmul.mubr.f32.gmra.mxu1 %v326_v19 }
 0x1a4   :  { %4220 = vmatprep.mubr.msk.f32.mxu1 %vm4645_vm0, %v4644_v43 }
 0x207   :  { %v4091_v14 = vpop.f32.mrf.mxu1 }
 0x209   :  { %v393_v15 = vpop.f32.mrf.mxu1 }
 0x20b   :  { %v4094_v21 = vpop.f32.mrf.mxu1 }
 0x20c   :  { %4170 = vmatmul.mubr.msk.f32.vlgmr.msra.gmra.mxu0 %vm640_vm1, %v4094_v21  ;;  %v1685_v21 = vld [vmem:[%s6251_s4 + $0x170] sm:$0xff] }
 0x20d   :  { %v403_v23 = vpop.f32.mrf.mxu1  ;;  %4172 = vmatprep.mubr.msk.f32.mxu0 %vm4645_vm0, %v4644_v43  ;;  %4179 = vmatpush3.msra.mxu0 %v635_v20 }
 0x20e   :  { %4180 = vmatprep.subr.mxu0 %v4644_v43 }
 0x20f   :  { %v4097_v24 = vpop.f32.mrf.mxu1  ;;  %4181 = vmatpush3.msra.mxu0 %v634_v22 }
 0x210   :  { %4182 = vmatprep.subr.mxu0 %v4644_v43 }
 0x211   :  { %v413_v4 = vpop.f32.mrf.mxu1  ;;  %4183 = vmatpush3.msra.mxu0 %v633_v13 }
 0x212   :  { %4173 = vmatmul.mubr.msk.f32.gmra.mxu0 %vm640_vm1, %v413_v4  ;;  %4184 = vmatprep.subr.mxu0 %v4644_v43  ;;  %v1683_v4 = vld [vmem:[%s6251_s4 + $0x160] sm:$0xff] }
 0x213   :  { %4175 = vmatprep.mubr.msk.f32.mxu0 %vm4645_vm0, %v4644_v43  ;;  %v4100_v10 = vpop.f32.mrf.mxu1  ;;  %4185 = vmatpush3.msra.mxu0 %v632_v3 }
 0x214   :  { %4195 = vmatprep.subr.mxu0 %v4644_v43 }
 0x215   :  { %v423_v1 = vpop.f32.mrf.mxu1 }
 0x216   :  { %4176 = vmatmul.mubr.msk.f32.gmra.mxu0 %vm640_vm1, %v4097_v24  ;;  %v1590_v24 = vld [vmem:[%s6251_s4 + $0x158] sm:$0xff] }
 0x217   :  { %4186 = vmatprep.mubr.msk.f32.mxu0 %vm4645_vm0, %v4644_v43  ;;  %v4103_v7 = vpop.f32.mrf.mxu1 }
 0x218   :  { %4221 = vmatmul.mubr.msk.f32.vlgmr.msra.gmra.mxu1 %vm640_vm1, %v4103_v7  ;;  %v1588_v7 = vld [vmem:[%s6251_s4 + $0x148] sm:$0xff] }
 0x219   :  { %v5181_v26 = vpop.f32.mrf.mxu1  ;;  %4223 = vmatprep.mubr.msk.f32.mxu1 %vm4645_vm0, %v4644_v43  ;;  %4247 = vmatpush3.msra.mxu1 %v1110_v2 }
 0x21a   :  { %4187 = vmatmul.mubr.msk.f32.vlgmr.msra.gmra.mxu0 %vm640_vm1, %v393_v15  ;;  %4248 = vmatprep.subr.mxu1 %v4644_v43  ;;  %v1686_v15 = vld [vmem:[%s6251_s4 + $0x178] sm:$0xff] }
 0x21b   :  { %4189 = vmatprep.mubr.msk.f32.mxu0 %vm4645_vm0, %v4644_v43  ;;  %4196 = vmatpush3.msra.mxu0 %v822_v25  ;;  %v4106_v29 = vpop.f32.mrf.mxu1 }
 0x21c   :  { %4197 = vmatprep.subr.mxu0 %v4644_v43  ;;  %4249 = vmatpush3.msra.mxu1 %v1109_v27  ;;  %v1878_v27 = vld [vmem:[%s6251_s4 + $0x1b8] sm:$0xff] }
 0x21d   :  { %4198 = vmatpush3.msra.mxu0 %v821_v28  ;;  %v443_v31 = vpop.f32.mrf.mxu1  ;;  %4250 = vmatprep.subr.mxu1 %v4644_v43 }
 0x21e   :  { %4190 = vmatmul.mubr.msk.f32.gmra.mxu0 %vm640_vm1, %v4091_v14  ;;  %4199 = vmatprep.subr.mxu0 %v4644_v43  ;;  %v1395_v14 = vld [vmem:[%s6251_s4 + $0x100] sm:$0xff] }
 0x21f   :  { %4192 = vmatprep.mubr.msk.f32.mxu0 %vm4645_vm0, %v4644_v43  ;;  %4200 = vmatpush3.msra.mxu0 %v820_v30  ;;  %v5207_v33 = vpop.f32.mrf.mxu1 }
 0x220   :  { %4201 = vmatprep.subr.mxu0 %v4644_v43  ;;  %4224 = vmatmul.mubr.msk.f32.gmra.mxu1 %vm640_vm1, %v443_v31  ;;  %v1876_v31 = vld [vmem:[%s6251_s4 + $0x1a8] sm:$0xff] }
 0x221   :  { %4202 = vmatpush3.msra.mxu0 %v819_v32  ;;  %v453_v35 = vpop.f32.mrf.mxu1  ;;  %4226 = vmatprep.mubr.msk.f32.mxu1 %vm4645_vm0, %v4644_v43 }
 0x222   :  { %4193 = vmatmul.mubr.msk.f32.gmra.mxu0 %vm640_vm1, %v403_v23  ;;  %4251 = vmatpush3.msra.mxu1 %v1108_v34  ;;  %v1684_v23 = vld [vmem:[%s6251_s4 + $0x168] sm:$0xff] }
 0x223   :  { %4203 = vmatprep.mubr.msk.f32.mxu0 %vm4645_vm0, %v4644_v43  ;;  %v4112_v37 = vpop.f32.mrf.mxu1  ;;  %4229 = vmatprep.subr.mxu0 %v4644_v43 }
 0x224   :  { %4227 = vmatmul.mubr.msk.f32.gmra.mxu1 %vm640_vm1, %v4106_v29  ;;  %4252 = vmatprep.subr.mxu1 %v4644_v43  ;;  %v1877_v29 = vld [vmem:[%s6251_s4 + $0x1b0] sm:$0xff] }
 0x225   :  { %v5228_v39 = vpop.f32.mrf.mxu1  ;;  %4253 = vmatpush3.msra.mxu1 %v1107_v36  ;;  %4254 = vmatprep.mubr.msk.f32.mxu1 %vm4645_vm0, %v4644_v43  ;;  %v1781_v36 = vld [vmem:[%s6251_s4 + $0x190] sm:$0xff] }
 0x226   :  { %4204 = vmatmul.mubr.msk.f32.vlgmr.msra.gmra.mxu0 %vm640_vm1, %v423_v1  ;;  %4280 = vmatprep.subr.mxu1 %v4644_v43  ;;  %v1589_v1 = vld [vmem:[%s6251_s4 + $0x150] sm:$0xff] }
 0x227   :  { %4206 = vmatprep.mubr.msk.f32.mxu0 %vm4645_vm0, %v4644_v43  ;;  %4230 = vmatpush3.msra.mxu0 %v1014_v38  ;;  %v4115_v41 = vpop.f32.mrf.mxu1  ;;  %v1780_v38 = vld [vmem:[%s6251_s4 + $0x188] sm:$0xff] }
 0x228   :  { %4231 = vmatprep.subr.mxu0 %v4644_v43  ;;  %4255 = vmatmul.mubr.msk.f32.vlgmr.msra.gmra.mxu1 %vm640_vm1, %v4112_v37 }
 0x229   :  { %4232 = vmatpush3.msra.mxu0 %v1013_v40  ;;  %v473_v44 = vpop.f32.mrf.mxu1  ;;  %4257 = vmatprep.mubr.msk.f32.mxu1 %vm4645_vm0, %v4644_v43  ;;  %v2070_v40 = vld [vmem:[%s6251_s4 + $0x1f8] sm:$0xff] }
 0x22a   :  { %4207 = vmatmul.mubr.msk.f32.gmra.mxu0 %vm640_vm1, %v4100_v10  ;;  %4233 = vmatprep.subr.mxu0 %v4644_v43 }
 0x22b   :  { %4209 = vmatprep.mubr.msk.f32.mxu0 %vm4645_vm0, %v4644_v43  ;;  %4234 = vmatpush3.msra.mxu0 %v1012_v42  ;;  %v5256_v47 = vpop.f32.mrf.mxu1  ;;  %v2069_v42 = vld [vmem:[%s6251_s4 + $0x1f0] sm:$0xff] }
 0x22c   :  { %4235 = vmatprep.subr.mxu0 %v4644_v43  ;;  %4258 = vmatmul.mubr.msk.f32.gmra.mxu1 %vm640_vm1, %v473_v44  ;;  %v2068_v44 = vld [vmem:[%s6251_s4 + $0x1e8] sm:$0xff] }
 0x22d   :  { %4236 = vmatpush3.msra.mxu0 %v1011_v45  ;;  %4281 = vmatpush3.msra.mxu1 %v1302_v46  ;;  %v483_v48 = vpop.f32.mrf.mxu1  ;;  %v1974_v46 = vld [vmem:[%s6251_s4 + $0x1d8] sm:$0xff] }
 0x22e   :  { %4210 = vmatmul.mubr.msk.f32.gmra.mxu0 %vm640_vm1, %v5181_v26  ;;  %4282 = vmatprep.subr.mxu1 %v4644_v43  ;;  %v1587_v26 = vld [vmem:[%s6251_s4 + $0x140] sm:$0xff] }
 0x22f   :  { %4237 = vmatprep.mubr.msk.f32.mxu0 %vm4645_vm0, %v4644_v43  ;;  %4260 = vmatprep.mubr.msk.f32.mxu1 %vm4645_vm0, %v4644_v43  ;;  %v4121_v50 = vpop.f32.mrf.mxu1 }
 0x230   :  { %4283 = vmatpush3.msra.mxu1 %v1301_v49  ;;  %4263 = vmatprep.subr.mxu0 %v4644_v43  ;;  %v1973_v49 = vld [vmem:[%s6251_s4 + $0x1d0] sm:$0xff] }
 0x231   :  { %4261 = vmatmul.mubr.msk.f32.gmra.mxu1 %vm640_vm1, %v4115_v41  ;;  %4284 = vmatprep.subr.mxu1 %v4644_v43  ;;  %v5276_v52 = vpop.f32.mrf.mxu1 }
 0x232   :  { %4238 = vmatmul.mubr.msk.f32.vlgmr.msra.gmra.mxu0 %vm640_vm1, %v453_v35  ;;  %4285 = vmatpush3.msra.mxu1 %v1300_v51  ;;  %v1875_v35 = vld [vmem:[%s6251_s4 + $0x1a0] sm:$0xff] }
 0x233   :  { %4240 = vmatprep.mubr.msk.f32.mxu0 %vm4645_vm0, %v4644_v43  ;;  %4286 = vmatprep.subr.mxu1 %v4644_v43  ;;  %v4124_v55 = vpop.f32.mrf.mxu1 }
 0x234   :  { %4264 = vmatpush3.msra.mxu0 %v1206_v53  ;;  %4287 = vmatpush3.msra.mxu1 %v1299_v54 }
 0x235   :  { %4288 = vmatprep.mubr.msk.f32.mxu1 %vm4645_vm0, %v4644_v43  ;;  %4265 = vmatprep.subr.mxu0 %v4644_v43  ;;  %v503_v57 = vpop.f32.mrf.mxu1 }
 0x236   :  { %4241 = vmatmul.mubr.msk.f32.gmra.mxu0 %vm640_vm1, %v5207_v33  ;;  %4289 = vmatmul.mubr.msk.f32.vlgmr.msra.gmra.mxu1 %vm640_vm1, %v4121_v50  ;;  %v1782_v33 = vld [vmem:[%s6251_s4 + $0x198] sm:$0xff]  ;;  %v1972_v50 = vld [vmem:[%s6251_s4 + $0x1c8] sm:$0xff] }
 0x237   :  { %4243 = vmatprep.mubr.msk.f32.mxu0 %vm4645_vm0, %v4644_v43  ;;  %4266 = vmatpush3.msra.mxu0 %v1205_v56  ;;  %v5302_v59 = vpop.f32.mrf.mxu1 }
 0x238   :  { %4267 = vmatprep.subr.mxu0 %v4644_v43  ;;  %4291 = vmatprep.mubr.msk.f32.mxu1 %vm4645_vm0, %v4644_v43 }
 0x239   :  { %4268 = vmatpush3.msra.mxu0 %v1204_v58  ;;  %4314 = vmatprep.subr.mxu1 %v4644_v43  ;;  %v513_v62 = vpop.f32.mrf.mxu1 }
 0x23a   :  { %4244 = vmatmul.mubr.msk.f32.gmra.mxu0 %vm640_vm1, %v5228_v39  ;;  %4269 = vmatprep.subr.mxu0 %v4644_v43  ;;  %v1779_v39 = vld [vmem:[%s6251_s4 + $0x180] sm:$0xff] }
 0x23b   :  { %4292 = vmatmul.mubr.msk.f32.gmra.mxu1 %vm640_vm1, %v503_v57  ;;  %4270 = vmatpush3.msra.mxu0 %v1203_v60  ;;  %v4130_v0 = vpop.f32.mrf.mxu1 }
 0x23c   :  { %4271 = vmatprep.mubr.msk.f32.mxu0 %vm4645_vm0, %v4644_v43  ;;  %4315 = vmatpush3.msra.mxu1 %v1494_v61 }
 0x23d   :  { %4316 = vmatprep.subr.mxu1 %v4644_v43  ;;  %4294 = vmatprep.mubr.msk.f32.mxu1 %vm4645_vm0, %v4644_v43  ;;  %v5329_v6 = vpop.f32.mrf.mxu1 }
 0x23e   :  { %4272 = vmatmul.mubr.msk.f32.vlgmr.msra.gmra.mxu0 %vm640_vm1, %v483_v48  ;;  %4317 = vmatpush3.msra.mxu1 %v1493_v63 }
 0x23f   :  { %4295 = vmatmul.mubr.msk.f32.gmra.mxu1 %vm640_vm1, %v4124_v55  ;;  %4318 = vmatprep.subr.mxu1 %v4644_v43  ;;  %v4133_v9 = vpop.f32.mrf.mxu1 }
 0x240   :  { %4274 = vmatprep.mubr.msk.f32.mxu0 %vm4645_vm0, %v4644_v43  ;;  %4319 = vmatpush3.msra.mxu1 %v1492_v5 }
 0x241   :  { %4297 = vmatprep.subr.mxu0 %v4644_v43  ;;  %4320 = vmatprep.subr.mxu1 %v4644_v43  ;;  %v533_v12 = vpop.f32.mrf.mxu1 }
 0x242   :  { %4275 = vmatmul.mubr.msk.f32.gmra.mxu0 %vm640_vm1, %v5256_v47  ;;  %4321 = vmatpush3.msra.mxu1 %v1491_v8  ;;  %v2067_v47 = vld [vmem:[%s6251_s4 + $0x1e0] sm:$0xff] }
 0x243   :  { %4298 = vmatpush3.msra.mxu0 %v1398_v11  ;;  %4322 = vmatprep.mubr.msk.f32.mxu1 %vm4645_vm0, %v4644_v43  ;;  %v5351_v17 = vpop.f32.mrf.mxu1 }
 0x244   :  { %4299 = vmatprep.subr.mxu0 %v4644_v43  ;;  %4323 = vmatmul.mubr.msk.f32.vlgmr.msra.gmra.mxu1 %vm640_vm1, %v4130_v0 }
 0x245   :  { %4277 = vmatprep.mubr.msk.f32.mxu0 %vm4645_vm0, %v4644_v43  ;;  %4300 = vmatpush3.msra.mxu0 %v1397_v16  ;;  %v543_v19 = vpop.f32.mrf.mxu1 }
 0x246   :  { %4278 = vmatmul.mubr.msk.f32.gmra.mxu0 %vm640_vm1, %v5276_v52  ;;  %4301 = vmatprep.subr.mxu0 %v4644_v43  ;;  %v1971_v52 = vld [vmem:[%s6251_s4 + $0x1c0] sm:$0xff] }
 0x247   :  { %4302 = vmatpush3.msra.mxu0 %v1396_v18  ;;  %4325 = vmatprep.mubr.msk.f32.mxu1 %vm4645_vm0, %v4644_v43  ;;  %v4139_v20 = vpop.f32.mrf.mxu1 }
 0x248   :  { %4303 = vmatprep.subr.mxu0 %v4644_v43  ;;  %4326 = vmatmul.mubr.msk.f32.gmra.mxu1 %vm640_vm1, %v533_v12 }
 0x249   :  { %4348 = vmatprep.subr.mxu1 %v4644_v43  ;;  %4304 = vmatpush3.msra.mxu0 %v1395_v14  ;;  %v5377_v22 = vpop.f32.mrf.mxu1 }
 0x24a   :  { %4305 = vmatprep.mubr.msk.f32.mxu0 %vm4645_vm0, %v4644_v43  ;;  %4349 = vmatpush3.msra.mxu1 %v1686_v15 }
 0x24b   :  { %4306 = vmatmul.mubr.msk.f32.vlgmr.msra.gmra.mxu0 %vm640_vm1, %v513_v62  ;;  %4350 = vmatprep.subr.mxu1 %v4644_v43  ;;  %v4142_v13 = vpop.f32.mrf.mxu1 }
 0x24c   :  { %4328 = vmatprep.mubr.msk.f32.mxu1 %vm4645_vm0, %v4644_v43  ;;  %4351 = vmatpush3.msra.mxu1 %v1685_v21 }
 0x24d   :  { %4329 = vmatmul.mubr.msk.f32.gmra.mxu1 %vm640_vm1, %v4133_v9  ;;  %4352 = vmatprep.subr.mxu1 %v4644_v43  ;;  %v563_v3 = vpop.f32.mrf.mxu1 }
 0x24e   :  { %4308 = vmatprep.mubr.msk.f32.mxu0 %vm4645_vm0, %v4644_v43  ;;  %4353 = vmatpush3.msra.mxu1 %v1684_v23 }
 0x24f   :  { %4309 = vmatmul.mubr.msk.f32.gmra.mxu0 %vm640_vm1, %v5302_v59  ;;  %4331 = vmatprep.subr.mxu0 %v4644_v43  ;;  %v5401_v10 = vpop.f32.mrf.mxu1 }
 0x250   :  { %4354 = vmatprep.subr.mxu1 %v4644_v43  ;;  %4332 = vmatpush3.msra.mxu0 %v1590_v24  ;;  %v2338_v24 = vld [vmem:[%s6252_s7 + $0x78] sm:$0xff] }
 0x251   :  { %4355 = vmatpush3.msra.mxu1 %v1683_v4  ;;  %4356 = vmatprep.mubr.msk.f32.mxu1 %vm4645_vm0, %v4644_v43  ;;  %v573_v2 = vpop.f32.mrf.mxu1 }
 0x252   :  { %4333 = vmatprep.subr.mxu0 %v4644_v43  ;;  %4357 = vmatmul.mubr.msk.f32.vlgmr.msra.gmra.mxu1 %vm640_vm1, %v4139_v20 }
 0x253   :  { %4311 = vmatprep.mubr.msk.f32.mxu0 %vm4645_vm0, %v4644_v43  ;;  %4334 = vmatpush3.msra.mxu0 %v1589_v1  ;;  %v4148_v25 = vpop.f32.mrf.mxu1 }
 0x254   :  { %4312 = vmatmul.mubr.msk.f32.gmra.mxu0 %vm640_vm1, %v5329_v6  ;;  %4335 = vmatprep.subr.mxu0 %v4644_v43 }
 0x255   :  { %4336 = vmatpush3.msra.mxu0 %v1588_v7  ;;  %4359 = vmatprep.mubr.msk.f32.mxu1 %vm4645_vm0, %v4644_v43  ;;  %v5427_v28 = vpop.f32.mrf.mxu1 }
 0x256   :  { %4337 = vmatprep.subr.mxu0 %v4644_v43  ;;  %4360 = vmatmul.mubr.msk.f32.gmra.mxu1 %vm640_vm1, %v563_v3  ;;  %v2337_v3 = vld [vmem:[%s6252_s7 + $0x70] sm:$0xff] }
 0x257   :  { %4382 = vmatprep.subr.mxu1 %v4644_v43  ;;  %4338 = vmatpush3.msra.mxu0 %v1587_v26  ;;  %v4151_v30 = vpop.f32.mrf.mxu1 }
 0x258   :  { %4339 = vmatprep.mubr.msk.f32.mxu0 %vm4645_vm0, %v4644_v43  ;;  %4383 = vmatpush3.msra.mxu1 %v1878_v27  ;;  %v2335_v27 = vld [vmem:[%s6252_s7 + $0x60] sm:$0xff] }
 0x259   :  { %4340 = vmatmul.mubr.msk.f32.vlgmr.msra.gmra.mxu0 %vm640_vm1, %v543_v19  ;;  %4384 = vmatprep.subr.mxu1 %v4644_v43  ;;  %v593_v32 = vpop.f32.mrf.mxu1 }
 0x25a   :  { %4362 = vmatprep.mubr.msk.f32.mxu1 %vm4645_vm0, %v4644_v43  ;;  %4385 = vmatpush3.msra.mxu1 %v1877_v29 }
 0x25b   :  { %4363 = vmatmul.mubr.msk.f32.gmra.mxu1 %vm640_vm1, %v4142_v13  ;;  %4386 = vmatprep.subr.mxu1 %v4644_v43  ;;  %v5449_v34 = vpop.f32.mrf.mxu1 }
 0x25c   :  { %4342 = vmatprep.mubr.msk.f32.mxu0 %vm4645_vm0, %v4644_v43  ;;  %4387 = vmatpush3.msra.mxu1 %v1876_v31  ;;  %v2334_v31 = vld [vmem:[%s6252_s7 + $0x58] sm:$0xff] }
 0x25d   :  { %4343 = vmatmul.mubr.msk.f32.gmra.mxu0 %vm640_vm1, %v5351_v17  ;;  %4365 = vmatprep.subr.mxu0 %v4644_v43  ;;  %v603_v37 = vpop.f32.mrf.mxu1 }
 0x25e   :  { %4388 = vmatprep.subr.mxu1 %v4644_v43  ;;  %4366 = vmatpush3.msra.mxu0 %v1782_v33 }
 0x25f   :  { %4389 = vmatpush3.msra.mxu1 %v1875_v35  ;;  %4390 = vmatprep.mubr.msk.f32.mxu1 %vm4645_vm0, %v4644_v43  ;;  %v4157_v41 = vpop.f32.mrf.mxu1  ;;  %v2333_v35 = vld [vmem:[%s6252_s7 + $0x50] sm:$0xff] }
 0x260   :  { %4367 = vmatprep.subr.mxu0 %v4644_v43  ;;  %4391 = vmatmul.mubr.msk.f32.vlgmr.msra.gmra.mxu1 %vm640_vm1, %v4148_v25 }
 0x261   :  { %4345 = vmatprep.mubr.msk.f32.mxu0 %vm4645_vm0, %v4644_v43  ;;  %4368 = vmatpush3.msra.mxu0 %v1781_v36  ;;  %v613_v45 = vpop.f32.mrf.mxu1 }
 0x262   :  { %4346 = vmatmul.mubr.msk.f32.gmra.mxu0 %vm640_vm1, %v5377_v22  ;;  %4369 = vmatprep.subr.mxu0 %v4644_v43 }
 0x263   :  { %4370 = vmatpush3.msra.mxu0 %v1780_v38  ;;  %4393 = vmatprep.mubr.msk.f32.mxu1 %vm4645_vm0, %v4644_v43  ;;  %v4160_v48 = vpop.f32.mrf.mxu1 }
 0x264   :  { %4371 = vmatprep.subr.mxu0 %v4644_v43  ;;  %4394 = vmatmul.mubr.msk.f32.gmra.mxu1 %vm640_vm1, %v593_v32 }
 0x265   :  { %4416 = vmatprep.subr.mxu1 %v4644_v43  ;;  %4372 = vmatpush3.msra.mxu0 %v1779_v39  ;;  %v623_v51 = vpop.f32.mrf.mxu1 }
 0x266   :  { %4373 = vmatprep.mubr.msk.f32.mxu0 %vm4645_vm0, %v4644_v43  ;;  %4417 = vmatpush3.msra.mxu1 %v2070_v40 }
 0x267   :  { %4374 = vmatmul.mubr.msk.f32.vlgmr.msra.gmra.mxu0 %vm640_vm1, %v573_v2  ;;  %4418 = vmatprep.subr.mxu1 %v4644_v43  ;;  %v2336_v2 = vld [vmem:[%s6252_s7 + $0x68] sm:$0xff] }
 0x268   :  { %4396 = vmatprep.mubr.msk.f32.mxu1 %vm4645_vm0, %v4644_v43  ;;  %4419 = vmatpush3.msra.mxu1 %v2069_v42 }
 0x269   :  { %4397 = vmatmul.mubr.msk.f32.gmra.mxu1 %vm640_vm1, %v4151_v30  ;;  %4420 = vmatprep.subr.mxu1 %v4644_v43 }
 0x26a   :  { %4376 = vmatprep.mubr.msk.f32.mxu0 %vm4645_vm0, %v4644_v43  ;;  %4421 = vmatpush3.msra.mxu1 %v2068_v44 }
 0x26b   :  { %4377 = vmatmul.mubr.msk.f32.gmra.mxu0 %vm640_vm1, %v5401_v10  ;;  %4399 = vmatprep.subr.mxu0 %v4644_v43 }
 0x26c   :  { %4422 = vmatprep.subr.mxu1 %v4644_v43  ;;  %4400 = vmatpush3.msra.mxu0 %v1974_v46 }
 0x26d   :  { %4423 = vmatpush3.msra.mxu1 %v2067_v47  ;;  %4424 = vmatprep.mubr.msk.f32.mxu1 %vm4645_vm0, %v4644_v43 }
 0x26e   :  { %4401 = vmatprep.subr.mxu0 %v4644_v43  ;;  %4425 = vmatmul.mubr.msk.f32.vlgmr.msra.gmra.mxu1 %vm640_vm1, %v4157_v41 }
 0x26f   :  { %4379 = vmatprep.mubr.msk.f32.mxu0 %vm4645_vm0, %v4644_v43  ;;  %4402 = vmatpush3.msra.mxu0 %v1973_v49 }
 0x270   :  { %4380 = vmatmul.mubr.msk.f32.gmra.mxu0 %vm640_vm1, %v5427_v28  ;;  %4403 = vmatprep.subr.mxu0 %v4644_v43 }
 0x271   :  { %4404 = vmatpush3.msra.mxu0 %v1972_v50  ;;  %4427 = vmatprep.mubr.msk.f32.mxu1 %vm4645_vm0, %v4644_v43 }
 0x272   :  { %4405 = vmatprep.subr.mxu0 %v4644_v43  ;;  %4428 = vmatmul.mubr.msk.f32.gmra.mxu1 %vm640_vm1, %v623_v51 }
 0x273   :  { %4406 = vmatpush3.msra.mxu0 %v1971_v52  ;;  %4407 = vmatprep.mubr.msk.f32.mxu0 %vm4645_vm0, %v4644_v43 }
 0x274   :  { %4408 = vmatmul.mubr.msk.f32.vlgmr.msra.gmra.mxu0 %vm640_vm1, %v603_v37  ;;  %4430 = vmatprep.mubr.msk.f32.mxu1 %vm4645_vm0, %v4644_v43 }
 0x275   :  { %4410 = vmatprep.mubr.msk.f32.mxu0 %vm4645_vm0, %v4644_v43  ;;  %4433 = vmatprep.subr.mxu0 %v4644_v43 }
 0x276   :  { %4431 = vmatmul.mubr.msk.f32.gmra.mxu1 %vm640_vm1, %v4160_v48  ;;  %4466 = vmatprep.subr.mxu1 %v4644_v43 }
 0x277   :  { %4482 = vmatprep.mubr.msk.f32.mxu1 %vm4645_vm0, %v4644_v43  ;;  %4467 = vmatpush3.msra.mxu1 %v2338_v24 }
 0x278   :  { %4411 = vmatmul.mubr.msk.f32.gmra.mxu0 %vm640_vm1, %v5449_v34  ;;  %4468 = vmatprep.subr.mxu1 %v4644_v43 }
 0x279   :  { %4413 = vmatprep.mubr.msk.f32.mxu0 %vm4645_vm0, %v4644_v43  ;;  %4469 = vmatpush3.msra.mxu1 %v2337_v3 }
 0x27a   :  { %4470 = vmatprep.subr.mxu1 %v4644_v43 }
 0x27b   :  { %4471 = vmatpush3.msra.mxu1 %v2336_v2 }
 0x27c   :  { %4414 = vmatmul.mubr.msk.f32.gmra.mxu0 %vm640_vm1, %v613_v45  ;;  %4472 = vmatprep.subr.mxu1 %v4644_v43 }
 0x27d   :  { %4439 = vmatprep.mubr.msk.f32.mxu0 %vm4645_vm0, %v4644_v43  ;;  %4473 = vmatpush3.msra.mxu1 %v2335_v27 }
 0x27e   :  { %4474 = vmatprep.subr.mxu1 %v4644_v43 }
 0x27f   :  { %4475 = vmatpush3.msra.mxu1 %v2334_v31 }
 0x280   :  { %4476 = vmatprep.subr.mxu1 %v4644_v43 }
 0x281   :  { %4477 = vmatpush3.msra.mxu1 %v2333_v35 }
 0x282   :  { %4478 = vmatprep.subr.mxu1 %v4644_v43 }
 0x2cc   :  { %v716_v53 = vpop.f32.mrf.mxu0 }
 0x2ce   :  { %v4171_v54 = vpop.f32.mrf.mxu0 }
 0x2d2   :  { %v721_v55 = vpop.f32.mrf.mxu0 }
 0x2d4   :  { %v4174_v56 = vpop.f32.mrf.mxu0 }
 0x2d6   :  { %v726_v57 = vpop.f32.mrf.mxu0 }
 0x2d8   :  { %v4177_v58 = vpop.f32.mrf.mxu0  ;;  %v994_v59 = vpop.f32.mrf.mxu1 }
 0x2da   :  { %v805_v60 = vpop.f32.mrf.mxu0  ;;  %v4222_v61 = vpop.f32.mrf.mxu1 }
 0x2db   :  { %v806_v62 = vadd.f32 %v805_v60, %v716_v53 }
 0x2dc   :  { %v4188_v63 = vpop.f32.mrf.mxu0 }
 0x2de   :  { %v810_v0 = vpop.f32.mrf.mxu0 }
 0x2df   :  { %v811_v5 = vadd.f32 %v810_v0, %v721_v55 }
 0x2e0   :  { %v4191_v6 = vpop.f32.mrf.mxu0  ;;  %v999_v8 = vpop.f32.mrf.mxu1 }
 0x2e2   :  { %v815_v9 = vpop.f32.mrf.mxu0  ;;  %v4225_v11 = vpop.f32.mrf.mxu1 }
 0x2e3   :  { %v816_v12 = vadd.f32 %v815_v9, %v726_v57 }
 0x2e4   :  { %v4194_v16 = vpop.f32.mrf.mxu0  ;;  %v1004_v17 = vpop.f32.mrf.mxu1 }
 0x2e6   :  { %v898_v18 = vpop.f32.mrf.mxu0  ;;  %v4228_v19 = vpop.f32.mrf.mxu1 }
 0x2e7   :  { %v912_v14 = vadd.f32 %v898_v18, %v806_v62 }
 0x2e8   :  { %v4205_v15 = vpop.f32.mrf.mxu0  ;;  %v1186_v20 = vpop.f32.mrf.mxu1 }
 0x2e9   :  { %v1008_v21 = vadd.f32 %v994_v59, %v912_v14 }
 0x2ea   :  { %v903_v22 = vpop.f32.mrf.mxu0  ;;  %v4256_v23 = vpop.f32.mrf.mxu1 }
 0x2eb   :  { %v913_v13 = vadd.f32 %v903_v22, %v811_v5 }
 0x2ec   :  { %v4208_v4 = vpop.f32.mrf.mxu0  ;;  %v1191_v10 = vpop.f32.mrf.mxu1 }
 0x2ed   :  { %v1009_v1 = vadd.f32 %v999_v8, %v913_v13 }
 0x2ee   :  { %v908_v7 = vpop.f32.mrf.mxu0  ;;  %v4259_v25 = vpop.f32.mrf.mxu1 }
 0x2ef   :  { %v914_v26 = vadd.f32 %v908_v7, %v816_v12 }
 0x2f0   :  { %v4211_v28 = vpop.f32.mrf.mxu0 }
 0x2f1   :  { %v1196_v29 = vpop.f32.mrf.mxu1  ;;  %v1010_v30 = vadd.f32 %v1004_v17, %v914_v26 }
 0x2f2   :  { %v1090_v32 = vpop.f32.mrf.mxu0 }
 0x2f3   :  { %v1104_v33 = vadd.f32 %v1090_v32, %v1008_v21  ;;  %v4262_v34 = vpop.f32.mrf.mxu1 }
 0x2f4   :  { %v4239_v36 = vpop.f32.mrf.mxu0 }
 0x2f5   :  { %v1200_v37 = vadd.f32 %v1186_v20, %v1104_v33 }
 0x2f6   :  { %v1095_v38 = vpop.f32.mrf.mxu0  ;;  %v1378_v39 = vpop.f32.mrf.mxu1 }
 0x2f7   :  { %v1105_v40 = vadd.f32 %v1095_v38, %v1009_v1 }
 0x2f8   :  { %v4242_v41 = vpop.f32.mrf.mxu0  ;;  %v4290_v42 = vpop.f32.mrf.mxu1 }
 0x2f9   :  { %v1201_v44 = vadd.f32 %v1191_v10, %v1105_v40 }
 0x2fa   :  { %v1100_v45 = vpop.f32.mrf.mxu0 }
 0x2fb   :  { %v1383_v46 = vpop.f32.mrf.mxu1  ;;  %v1106_v21 = vadd.f32 %v1100_v45, %v1010_v30 }
 0x2fc   :  { %v4245_v47 = vpop.f32.mrf.mxu0 }
 0x2fd   :  { %v4293_v48 = vpop.f32.mrf.mxu1  ;;  %v1202_v10 = vadd.f32 %v1196_v29, %v1106_v21 }
 0x2fe   :  { %v1282_v49 = vpop.f32.mrf.mxu0 }
 0x2ff   :  { %v1388_v50 = vpop.f32.mrf.mxu1  ;;  %v1296_v4 = vadd.f32 %v1282_v49, %v1200_v37 }
 0x300   :  { %v4273_v51 = vpop.f32.mrf.mxu0 }
 0x301   :  { %v4296_v52 = vpop.f32.mrf.mxu1  ;;  %v1392_v27 = vadd.f32 %v1378_v39, %v1296_v4  ;;  %v2177_v4 = vld [vmem:[%s6254_s6 + $0x8] sm:$0xff] }
 0x302   :  { %v1287_v53 = vpop.f32.mrf.mxu0 }
 0x303   :  { %v1297_v13 = vadd.f32 %v1287_v53, %v1201_v44 }
 0x304   :  { %v4276_v54 = vpop.f32.mrf.mxu0  ;;  %v1570_v55 = vpop.f32.mrf.mxu1 }
 0x305   :  { %v1393_v25 = vadd.f32 %v1383_v46, %v1297_v13  ;;  %v2176_v13 = vld [vmem:[%s6254_s6] sm:$0xff] }
 0x306   :  { %v1292_v56 = vpop.f32.mrf.mxu0  ;;  %v4324_v57 = vpop.f32.mrf.mxu1 }
 0x307   :  { %v1298_v7 = vadd.f32 %v1292_v56, %v1202_v10  ;;  %v2178_v10 = vld [vmem:[%s6254_s6 + $0x10] sm:$0xff] }
 0x308   :  { %v4279_v58 = vpop.f32.mrf.mxu0  ;;  %v1575_v59 = vpop.f32.mrf.mxu1 }
 0x309   :  { %v1394_v33 = vadd.f32 %v1388_v50, %v1298_v7  ;;  %v2181_v7 = vld [vmem:[%s6254_s6 + $0x28] sm:$0xff] }
 0x30a   :  { %v4327_v60 = vpop.f32.mrf.mxu1 }
 0x30b   :  { %v1474_v61 = vpop.f32.mrf.mxu0 }
 0x30c   :  { %v1488_v32 = vadd.f32 %v1474_v61, %v1392_v27  ;;  %v2184_v27 = vld [vmem:[%s6254_s6 + $0x40] sm:$0xff] }
 0x30d   :  { %v4307_v62 = vpop.f32.mrf.mxu0  ;;  %v1580_v63 = vpop.f32.mrf.mxu1 }
 0x30e   :  { %v1584_v41 = vadd.f32 %v1570_v55, %v1488_v32  ;;  %v2491_v32 = vld [vmem:[%s6252_s7 + $0xa8] sm:$0xff] }
 0x30f   :  { %v1479_v0 = vpop.f32.mrf.mxu0  ;;  %v4330_v5 = vpop.f32.mrf.mxu1 }
 0x310   :  { %v1489_v28 = vadd.f32 %v1479_v0, %v1393_v25  ;;  %v2182_v25 = vld [vmem:[%s6254_s6 + $0x30] sm:$0xff] }
 0x311   :  { %v4310_v6 = vpop.f32.mrf.mxu0 }
 0x312   :  { %v1762_v8 = vpop.f32.mrf.mxu1  ;;  %v1585_v36 = vadd.f32 %v1575_v59, %v1489_v28  ;;  %v2332_v28 = vld [vmem:[%s6252_s7 + $0x48] sm:$0xff] }
 0x313   :  { %4479 = vmatpush3.msra.mxu1 %v2332_v28  ;;  %v2734_v28 = vld [vmem:[%s6252_s7 + $0x150] sm:$0xff] }
 0x314   :  { %v1484_v9 = vpop.f32.mrf.mxu0  ;;  %v4358_v11 = vpop.f32.mrf.mxu1  ;;  %4480 = vmatprep.subr.mxu1 %v4644_v43 }
 0x315   :  { %v1490_v30 = vadd.f32 %v1484_v9, %v1394_v33  ;;  %v2490_v33 = vld [vmem:[%s6252_s7 + $0xa0] sm:$0xff] }
 0x316   :  { %v4313_v12 = vpop.f32.mrf.mxu0  ;;  %v1767_v16 = vpop.f32.mrf.mxu1 }
 0x317   :  { %v1586_v45 = vadd.f32 %v1580_v63, %v1490_v30  ;;  %v2487_v30 = vld [vmem:[%s6252_s7 + $0x88] sm:$0xff] }
 0x318   :  { %v4361_v17 = vpop.f32.mrf.mxu1 }
 0x319   :  { %v1666_v18 = vpop.f32.mrf.mxu0 }
 0x31a   :  { %v1680_v44 = vadd.f32 %v1666_v18, %v1584_v41  ;;  %v2330_v41 = vld [vmem:[%s6252_s7 + $0x38] sm:$0xff] }
 0x31b   :  { %v4341_v19 = vpop.f32.mrf.mxu0  ;;  %v1772_v14 = vpop.f32.mrf.mxu1 }
 0x31c   :  { %v1776_v52 = vadd.f32 %v1762_v8, %v1680_v44  ;;  %v3612_v19 = vld [vmem:[%s6253_s5] ss:$0 sm:$0xff]  ;;  %v2328_v44 = vld [vmem:[%s6252_s7 + $0x28] sm:$0xff] }
 0x31d   :  { %v1671_v15 = vpop.f32.mrf.mxu0  ;;  %v4364_v20 = vpop.f32.mrf.mxu1 }
 0x31e   :  { %v1681_v42 = vadd.f32 %v1671_v15, %v1585_v36  ;;  %v2486_v36 = vld [vmem:[%s6252_s7 + $0x80] sm:$0xff] }
 0x31f   :  { %v4344_v22 = vpop.f32.mrf.mxu0 }
 0x320   :  { %v1954_v23 = vpop.f32.mrf.mxu1  ;;  %v1777_v39 = vadd.f32 %v1767_v16, %v1681_v42 }
 0x322   :  { %v1676_v24 = vpop.f32.mrf.mxu0  ;;  %v4392_v3 = vpop.f32.mrf.mxu1 }
 0x323   :  { %v1682_v48 = vadd.f32 %v1676_v24, %v1586_v45  ;;  %v2493_v24 = vld [vmem:[%s6252_s7 + $0xb8] sm:$0xff]  ;;  %v2492_v3 = vld [vmem:[%s6252_s7 + $0xb0] sm:$0xff] }
 0x324   :  { %v4347_v1 = vpop.f32.mrf.mxu0  ;;  %v1959_v2 = vpop.f32.mrf.mxu1  ;;  %v2657_v45 = vld [vmem:[%s6252_s7 + $0x138] sm:$0xff] }
 0x325   :  { %v1778_v57 = vadd.f32 %v1772_v14, %v1682_v48  ;;  %v2179_v1 = vld [vmem:[%s6254_s6 + $0x18] sm:$0xff]  ;;  %v2656_v48 = vld [vmem:[%s6252_s7 + $0x130] sm:$0xff] }
 0x326   :  { %v4395_v26 = vpop.f32.mrf.mxu1 }
 0x327   :  { %v1858_v31 = vpop.f32.mrf.mxu0  ;;  %v2183_v26 = vld [vmem:[%s6254_s6 + $0x38] sm:$0xff] }
 0x328   :  { %v1872_v56 = vadd.f32 %v1858_v31, %v1776_v52  ;;  %v2331_v31 = vld [vmem:[%s6252_s7 + $0x40] sm:$0xff] }
 0x329   :  { %v4375_v34 = vpop.f32.mrf.mxu0  ;;  %v1964_v35 = vpop.f32.mrf.mxu1  ;;  %4481 = vmatpush3.msra.mxu1 %v2331_v31  ;;  %v2733_v31 = vld [vmem:[%s6252_s7 + $0x148] sm:$0xff] }
 0x32a   :  { %v1968_v0 = vadd.f32 %v1954_v23, %v1872_v56  ;;  %4485 = vmatprep.subr.mxu1 %v4644_v43  ;;  %v2489_v34 = vld [vmem:[%s6252_s7 + $0x98] sm:$0xff]  ;;  %v2324_v56 = vld [vmem:[%s6252_s7 + $0x8] sm:$0xff] }
 0x32b   :  { %v1863_v38 = vpop.f32.mrf.mxu0  ;;  %v4398_v40 = vpop.f32.mrf.mxu1 }
 0x32c   :  { %v1873_v50 = vadd.f32 %v1863_v38, %v1777_v39 }
 0x32d   :  { %v4378_v37 = vpop.f32.mrf.mxu0 }
 0x32e   :  { %v2146_v29 = vpop.f32.mrf.mxu1  ;;  %v1969_v60 = vadd.f32 %v1959_v2, %v1873_v50  ;;  %v2180_v2 = vld [vmem:[%s6254_s6 + $0x20] sm:$0xff]  ;;  %v2329_v37 = vld [vmem:[%s6252_s7 + $0x30] sm:$0xff] }
 0x32f   :  { %v2325_v50 = vld [vmem:[%s6252_s7 + $0x10] sm:$0xff] }
 0x330   :  { %v1868_v47 = vpop.f32.mrf.mxu0  ;;  %v4426_v46 = vpop.f32.mrf.mxu1 }
 0x331   :  { %v1874_v55 = vadd.f32 %v1868_v47, %v1778_v57  ;;  %v2327_v46 = vld [vmem:[%s6252_s7 + $0x20] sm:$0xff]  ;;  %v2653_v57 = vld [vmem:[%s6252_s7 + $0x118] sm:$0xff] }
 0x332   :  { %v4381_v49 = vpop.f32.mrf.mxu0  ;;  %v2151_v51 = vpop.f32.mrf.mxu1 }
 0x333   :  { %v1970_v9 = vadd.f32 %v1964_v35, %v1874_v55  ;;  %v2488_v35 = vld [vmem:[%s6252_s7 + $0x90] sm:$0xff]  ;;  %v2326_v49 = vld [vmem:[%s6252_s7 + $0x18] sm:$0xff] }
 0x334   :  { %v2050_v53 = vpop.f32.mrf.mxu0  ;;  %v4429_v54 = vpop.f32.mrf.mxu1  ;;  %v2652_v55 = vld [vmem:[%s6252_s7 + $0x110] sm:$0xff] }
 0x335   :  { %v2064_v6 = vadd.f32 %v2050_v53, %v1968_v0  ;;  %v2654_v53 = vld [vmem:[%s6252_s7 + $0x120] sm:$0xff]  ;;  %v2574_v0 = vld [vmem:[%s6252_s7 + $0xf0] sm:$0xff] }
 0x336   :  { %v4409_v58 = vpop.f32.mrf.mxu0  ;;  %v2156_v59 = vpop.f32.mrf.mxu1 }
 0x337   :  { %v2160_v17 = vadd.f32 %v2146_v29, %v2064_v6  ;;  %v2573_v6 = vld [vmem:[%s6252_s7 + $0xe8] sm:$0xff] }
 0x338   :  { %v2055_v61 = vpop.f32.mrf.mxu0  ;;  %v4432_v62 = vpop.f32.mrf.mxu1 }
 0x339   :  { %v2065_v63 = vadd.f32 %v2055_v61, %v1969_v60  ;;  %v2170_v20 = vadd.f32 %v3612_v19, %v2160_v17  ;;  %v2575_v61 = vld [vmem:[%s6252_s7 + $0xf8] sm:$0xff] }
 0x33a   :  { %v4412_v5 = vpop.f32.mrf.mxu0  ;;  %v2821_v17 = vld [vmem:[%s6252_s7 + $0x1b8] sm:$0xff] }
 0x33b   :  { %v2161_v12 = vadd.f32 %v2151_v51, %v2065_v63  ;;  %v2173_v23 = vmax.f32 %v2170_v20, 0.0  ;;  %v2655_v51 = vld [vmem:[%s6252_s7 + $0x128] sm:$0xff] }
 0x33c   :  { %v2060_v11 = vpop.f32.mrf.mxu0  ;;  %v2651_v63 = vld [vmem:[%s6252_s7 + $0x108] sm:$0xff] }
 0x33d   :  { %v2066_v16 = vadd.f32 %v2060_v11, %v1970_v9  ;;  %v2171_v14 = vadd.f32 %v3612_v19, %v2161_v12  ;;  %v2650_v9 = vld [vmem:[%s6252_s7 + $0x100] sm:$0xff]  ;;  %v2569_v20 = vld [vmem:[%s6252_s7 + $0xc8] sm:$0xff] }
 0x33e   :  { %v4415_v8 = vpop.f32.mrf.mxu0  ;;  %v2572_v12 = vld [vmem:[%s6252_s7 + $0xe0] sm:$0xff] }
 0x33f   :  { %v2162_v18 = vadd.f32 %v2156_v59, %v2066_v16  ;;  %v2174_v22 = vmax.f32 %v2171_v14, 0.0  ;;  %v2323_v59 = vld [vmem:[%s6252_s7] sm:$0xff]  ;;  %v2571_v8 = vld [vmem:[%s6252_s7 + $0xd8] sm:$0xff]  ;;  %v2820_v14 = vld [vmem:[%s6252_s7 + $0x1b0] sm:$0xff] }
 0x341   :  { %v2172_v15 = vadd.f32 %v3612_v19, %v2162_v18  ;;  %v2570_v19 = vld [vmem:[%s6252_s7 + $0xd0] sm:$0xff] }
 0x343   :  { %v2175_v21 = vmax.f32 %v2172_v15, 0.0 }
 0x345   :  { %4434 = vmatpush3.msra.mxu0 %v2175_v21  ;;  %v2819_v21 = vld [vmem:[%s6252_s7 + $0x1a8] sm:$0xff] }
 0x346   :  { %4435 = vmatprep.subr.mxu0 %v4644_v43 }
 0x347   :  { %4436 = vmatpush3.msra.mxu0 %v2174_v22 }
 0x348   :  { %4437 = vmatprep.subr.mxu0 %v4644_v43 }
 0x349   :  { %4438 = vmatpush3.msra.mxu0 %v2173_v23  ;;  %v2568_v23 = vld [vmem:[%s6252_s7 + $0xc0] sm:$0xff] }
 0x34a   :  { %4440 = vmatmul.mubr.msk.f32.vlgmr.msra.gmra.mxu0 %vm2185_vm2, %v2176_v13  ;;  %4504 = vmatprep.subr.mxu0 %v4644_v43  ;;  %v2818_v13 = vld [vmem:[%s6252_s7 + $0x1a0] sm:$0xff] }
 0x34b   :  { %4442 = vmatprep.mubr.msk.f32.mxu0 %vm4645_vm0, %v4644_v43  ;;  %4505 = vmatpush3.msra.mxu0 %v2493_v24 }
 0x34c   :  { %4506 = vmatprep.subr.mxu0 %v4644_v43 }
 0x34d   :  { %4507 = vmatpush3.msra.mxu0 %v2492_v3  ;;  %v2739_v3 = vld [vmem:[%s6252_s7 + $0x178] sm:$0xff] }
 0x34e   :  { %4443 = vmatmul.mubr.msk.f32.gmra.mxu0 %vm2185_vm2, %v2177_v4  ;;  %4508 = vmatprep.subr.mxu0 %v4644_v43  ;;  %v2817_v4 = vld [vmem:[%s6252_s7 + $0x198] sm:$0xff] }
 0x34f   :  { %4445 = vmatprep.mubr.msk.f32.mxu0 %vm4645_vm0, %v4644_v43  ;;  %4509 = vmatpush3.msra.mxu0 %v2491_v32  ;;  %v2985_v32 = vld [vmem:[%s6252_s7 + $0x238] sm:$0xff] }
 0x350   :  { %4510 = vmatprep.subr.mxu0 %v4644_v43 }
 0x351   :  { %4511 = vmatpush3.msra.mxu0 %v2490_v33  ;;  %v2732_v33 = vld [vmem:[%s6252_s7 + $0x140] sm:$0xff] }
 0x352   :  { %4446 = vmatmul.mubr.msk.f32.gmra.mxu0 %vm2185_vm2, %v2178_v10  ;;  %4512 = vmatprep.subr.mxu0 %v4644_v43  ;;  %v2738_v10 = vld [vmem:[%s6252_s7 + $0x170] sm:$0xff] }
 0x353   :  { %4448 = vmatprep.mubr.msk.f32.mxu0 %vm4645_vm0, %v4644_v43  ;;  %4513 = vmatpush3.msra.mxu0 %v2489_v34  ;;  %v2984_v34 = vld [vmem:[%s6252_s7 + $0x230] sm:$0xff] }
 0x354   :  { %4514 = vmatprep.subr.mxu0 %v4644_v43 }
 0x355   :  { %4515 = vmatpush3.msra.mxu0 %v2488_v35  ;;  %v2903_v35 = vld [vmem:[%s6252_s7 + $0x1f8] sm:$0xff] }
 0x356   :  { %4449 = vmatmul.mubr.msk.f32.gmra.mxu0 %vm2185_vm2, %v2179_v1  ;;  %4516 = vmatprep.subr.mxu0 %v4644_v43  ;;  %v2816_v1 = vld [vmem:[%s6252_s7 + $0x190] sm:$0xff] }
 0x357   :  { %4451 = vmatprep.mubr.msk.f32.mxu0 %vm4645_vm0, %v4644_v43  ;;  %4517 = vmatpush3.msra.mxu0 %v2487_v30  ;;  %v2983_v30 = vld [vmem:[%s6252_s7 + $0x228] sm:$0xff] }
 0x358   :  { %4518 = vmatprep.subr.mxu0 %v4644_v43 }
 0x359   :  { %4519 = vmatpush3.msra.mxu0 %v2486_v36  ;;  %v2902_v36 = vld [vmem:[%s6252_s7 + $0x1f0] sm:$0xff] }
 0x35a   :  { %4452 = vmatmul.mubr.msk.f32.gmra.mxu0 %vm2185_vm2, %v2180_v2  ;;  %4542 = vmatprep.subr.mxu0 %v4644_v43  ;;  %v2737_v2 = vld [vmem:[%s6252_s7 + $0x168] sm:$0xff] }
 0x35b   :  { %4454 = vmatprep.mubr.msk.f32.mxu0 %vm4645_vm0, %v4644_v43 }
 0x35e   :  { %4455 = vmatmul.mubr.msk.f32.gmra.mxu0 %vm2185_vm2, %v2181_v7  ;;  %v2736_v7 = vld [vmem:[%s6252_s7 + $0x160] sm:$0xff] }
 0x35f   :  { %4457 = vmatprep.mubr.msk.f32.mxu0 %vm4645_vm0, %v4644_v43 }
 0x362   :  { %4458 = vmatmul.mubr.msk.f32.gmra.mxu0 %vm2185_vm2, %v2182_v25  ;;  %v2815_v25 = vld [vmem:[%s6252_s7 + $0x188] sm:$0xff] }
 0x363   :  { %4460 = vmatprep.mubr.msk.f32.mxu0 %vm4645_vm0, %v4644_v43 }
 0x366   :  { %4461 = vmatmul.mubr.msk.f32.gmra.mxu0 %vm2185_vm2, %v2183_v26  ;;  %v2735_v26 = vld [vmem:[%s6252_s7 + $0x158] sm:$0xff] }
 0x367   :  { %4463 = vmatprep.mubr.msk.f32.mxu0 %vm4645_vm0, %v4644_v43 }
 0x36a   :  { %4464 = vmatmul.mubr.msk.f32.gmra.mxu0 %vm2185_vm2, %v2184_v27  ;;  %v2814_v27 = vld [vmem:[%s6252_s7 + $0x180] sm:$0xff] }
 0x36b   :  { %4520 = vmatprep.mubr.msk.f32.mxu0 %vm4645_vm0, %v4644_v43 }
 0x40a   :  { %v2279_v38 = vpop.f32.mrf.mxu0 }
 0x40c   :  { %v4441_v40 = vpop.f32.mrf.mxu0 }
 0x40d   :  { %v2901_v40 = vld [vmem:[%s6252_s7 + $0x1e8] sm:$0xff] }
 0x40e   :  { %v2284_v42 = vpop.f32.mrf.mxu0 }
 0x40f   :  { %4483 = vmatmul.mubr.msk.f32.vlgmr.msra.gmra.mxu1 %vm2339_vm3, %v2284_v42  ;;  %v2900_v42 = vld [vmem:[%s6252_s7 + $0x1e0] sm:$0xff] }
 0x410   :  { %4486 = vmatpush3.msra.mxu1 %v2330_v41  ;;  %v4444_v29 = vpop.f32.mrf.mxu0  ;;  %4501 = vmatprep.mubr.msk.f32.mxu1 %vm4645_vm0, %v4644_v43  ;;  %v2981_v41 = vld [vmem:[%s6252_s7 + $0x218] sm:$0xff] }
 0x411   :  { %4487 = vmatprep.subr.mxu1 %v4644_v43  ;;  %v2899_v29 = vld [vmem:[%s6252_s7 + $0x1d8] sm:$0xff] }
 0x412   :  { %4488 = vmatpush3.msra.mxu1 %v2329_v37  ;;  %v2289_v47 = vpop.f32.mrf.mxu0  ;;  %v2980_v37 = vld [vmem:[%s6252_s7 + $0x210] sm:$0xff] }
 0x413   :  { %4489 = vmatprep.subr.mxu1 %v4644_v43  ;;  %4521 = vmatmul.mubr.msk.f32.vlgmr.msra.gmra.mxu0 %vm2339_vm3, %v2289_v47  ;;  %v2897_v47 = vld [vmem:[%s6252_s7 + $0x1c8] sm:$0xff] }
 0x414   :  { %4490 = vmatpush3.msra.mxu1 %v2328_v44  ;;  %4543 = vmatpush3.msra.mxu0 %v2657_v45  ;;  %v4447_v39 = vpop.f32.mrf.mxu0  ;;  %v2898_v44 = vld [vmem:[%s6252_s7 + $0x1d0] sm:$0xff]  ;;  %v2979_v45 = vld [vmem:[%s6252_s7 + $0x208] sm:$0xff] }
 0x415   :  { %4491 = vmatprep.subr.mxu1 %v4644_v43  ;;  %4544 = vmatprep.subr.mxu0 %v4644_v43  ;;  %v3175_v39 = vld [vmem:[%s6255_s10 + $0xf8] sm:$0xff] }
 0x416   :  { %4492 = vmatpush3.msra.mxu1 %v2327_v46  ;;  %4545 = vmatpush3.msra.mxu0 %v2656_v48  ;;  %v5709_v52 = vpop.f32.mrf.mxu0  ;;  %v2978_v46 = vld [vmem:[%s6252_s7 + $0x200] sm:$0xff] }
 0x417   :  { %4493 = vmatprep.subr.mxu1 %v4644_v43  ;;  %4546 = vmatprep.subr.mxu0 %v4644_v43  ;;  %v2896_v48 = vld [vmem:[%s6252_s7 + $0x1c0] sm:$0xff] }
 0x418   :  { %4494 = vmatpush3.msra.mxu1 %v2326_v49  ;;  %4547 = vmatpush3.msra.mxu0 %v2655_v51  ;;  %v4450_v54 = vpop.f32.mrf.mxu0  ;;  %v3174_v49 = vld [vmem:[%s6255_s10 + $0xf0] sm:$0xff]  ;;  %v3171_v51 = vld [vmem:[%s6255_s10 + $0xd8] sm:$0xff] }
 0x419   :  { %4495 = vmatprep.subr.mxu1 %v4644_v43  ;;  %4548 = vmatprep.subr.mxu0 %v4644_v43  ;;  %v3163_v54 = vld [vmem:[%s6255_s10 + $0x98] sm:$0xff] }
 0x41a   :  { %4496 = vmatpush3.msra.mxu1 %v2325_v50  ;;  %4549 = vmatpush3.msra.mxu0 %v2654_v53  ;;  %v2299_v58 = vpop.f32.mrf.mxu0  ;;  %v3167_v50 = vld [vmem:[%s6255_s10 + $0xb8] sm:$0xff]  ;;  %v3166_v53 = vld [vmem:[%s6255_s10 + $0xb0] sm:$0xff] }
 0x41b   :  { %4497 = vmatprep.subr.mxu1 %v4644_v43  ;;  %4550 = vmatprep.subr.mxu0 %v4644_v43 }
 0x41c   :  { %4498 = vmatpush3.msra.mxu1 %v2324_v56  ;;  %4551 = vmatpush3.msra.mxu0 %v2653_v57  ;;  %v4453_v60 = vpop.f32.mrf.mxu0  ;;  %v3162_v56 = vld [vmem:[%s6255_s10 + $0x90] sm:$0xff]  ;;  %v3159_v57 = vld [vmem:[%s6255_s10 + $0x78] sm:$0xff] }
 0x41d   :  { %4499 = vmatprep.subr.mxu1 %v4644_v43  ;;  %4552 = vmatprep.subr.mxu0 %v4644_v43  ;;  %v3151_v60 = vld [vmem:[%s6255_s10 + $0x38] sm:$0xff] }
 0x41e   :  { %4500 = vmatpush3.msra.mxu1 %v2323_v59  ;;  %4553 = vmatpush3.msra.mxu0 %v2652_v55  ;;  %v5740_v62 = vpop.f32.mrf.mxu0  ;;  %v3155_v59 = vld [vmem:[%s6255_s10 + $0x58] sm:$0xff]  ;;  %v3154_v55 = vld [vmem:[%s6255_s10 + $0x50] sm:$0xff] }
 0x41f   :  { %4502 = vmatmul.mubr.msk.f32.vlgmr.msra.gmra.mxu1 %vm2339_vm3, %v2279_v38  ;;  %4523 = vmatprep.subr.mxu1 %v4644_v43  ;;  %v2982_v38 = vld [vmem:[%s6252_s7 + $0x220] sm:$0xff] }
 0x420   :  { %4524 = vmatpush3.msra.mxu1 %v2575_v61  ;;  %4554 = vmatprep.subr.mxu0 %v4644_v43  ;;  %v4456_v5 = vpop.f32.mrf.mxu0 }
 0x421   :  { %4525 = vmatprep.subr.mxu1 %v4644_v43  ;;  %4539 = vmatprep.mubr.msk.f32.mxu1 %vm4645_vm0, %v4644_v43 }
 0x422   :  { %4526 = vmatpush3.msra.mxu1 %v2574_v0  ;;  %4555 = vmatpush3.msra.mxu0 %v2651_v63  ;;  %v5760_v11 = vpop.f32.mrf.mxu0 }
 0x423   :  { %4527 = vmatprep.subr.mxu1 %v4644_v43  ;;  %4556 = vmatprep.subr.mxu0 %v4644_v43 }
 0x424   :  { %4528 = vmatpush3.msra.mxu1 %v2573_v6  ;;  %4557 = vmatpush3.msra.mxu0 %v2650_v9  ;;  %v4459_v16 = vpop.f32.mrf.mxu0 }
 0x425   :  { %4529 = vmatprep.subr.mxu1 %v4644_v43  ;;  %4558 = vmatprep.mubr.msk.f32.mxu0 %vm4645_vm0, %v4644_v43 }
 0x426   :  { %4530 = vmatpush3.msra.mxu1 %v2572_v12  ;;  %4559 = vmatmul.mubr.msk.f32.vlgmr.msra.gmra.mxu0 %vm2339_vm3, %v2299_v58  ;;  %v5777_v18 = vpop.f32.mrf.mxu0  ;;  %v3158_v58 = vld [vmem:[%s6255_s10 + $0x70] sm:$0xff] }
 0x427   :  { %4531 = vmatprep.subr.mxu1 %v4644_v43  ;;  %4580 = vmatprep.subr.mxu0 %v4644_v43 }
 0x428   :  { %4532 = vmatpush3.msra.mxu1 %v2571_v8  ;;  %4581 = vmatpush3.msra.mxu0 %v2821_v17  ;;  %v4462_v15 = vpop.f32.mrf.mxu0 }
 0x429   :  { %4533 = vmatprep.subr.mxu1 %v4644_v43  ;;  %4582 = vmatprep.subr.mxu0 %v4644_v43 }
 0x42a   :  { %4534 = vmatpush3.msra.mxu1 %v2570_v19  ;;  %4583 = vmatpush3.msra.mxu0 %v2820_v14  ;;  %v5795_v22 = vpop.f32.mrf.mxu0 }
 0x42b   :  { %4535 = vmatprep.subr.mxu1 %v4644_v43  ;;  %4584 = vmatprep.subr.mxu0 %v4644_v43 }
 0x42c   :  { %4536 = vmatpush3.msra.mxu1 %v2569_v20  ;;  %4585 = vmatpush3.msra.mxu0 %v2819_v21  ;;  %v4465_v24 = vpop.f32.mrf.mxu0 }
 0x42d   :  { %4537 = vmatprep.subr.mxu1 %v4644_v43  ;;  %4586 = vmatprep.subr.mxu0 %v4644_v43 }
 0x42e   :  { %4538 = vmatpush3.msra.mxu1 %v2568_v23  ;;  %4587 = vmatpush3.msra.mxu0 %v2818_v13 }
 0x42f   :  { %4540 = vmatmul.mubr.msk.f32.vlgmr.msra.gmra.mxu1 %vm2339_vm3, %v5709_v52  ;;  %4561 = vmatprep.subr.mxu1 %v4644_v43  ;;  %v3170_v52 = vld [vmem:[%s6255_s10 + $0xd0] sm:$0xff] }
 0x430   :  { %4562 = vmatpush3.msra.mxu1 %v2739_v3  ;;  %4588 = vmatprep.subr.mxu0 %v4644_v43 }
 0x431   :  { %4563 = vmatprep.subr.mxu1 %v4644_v43  ;;  %4589 = vmatpush3.msra.mxu0 %v2817_v4 }
 0x432   :  { %4564 = vmatpush3.msra.mxu1 %v2738_v10  ;;  %4590 = vmatprep.subr.mxu0 %v4644_v43 }
 0x433   :  { %4565 = vmatprep.subr.mxu1 %v4644_v43  ;;  %4591 = vmatpush3.msra.mxu0 %v2816_v1  ;;  %v3631_v1 = vld [vmem:[%s6256_s8] ss:$0 sm:$0xff] }
 0x434   :  { %4566 = vmatpush3.msra.mxu1 %v2737_v2  ;;  %4592 = vmatprep.subr.mxu0 %v4644_v43 }
 0x435   :  { %4567 = vmatprep.subr.mxu1 %v4644_v43  ;;  %4577 = vmatprep.mubr.msk.f32.mxu1 %vm4645_vm0, %v4644_v43 }
 0x436   :  { %4568 = vmatpush3.msra.mxu1 %v2736_v7  ;;  %4593 = vmatpush3.msra.mxu0 %v2815_v25 }
 0x437   :  { %4569 = vmatprep.subr.mxu1 %v4644_v43  ;;  %4594 = vmatprep.subr.mxu0 %v4644_v43 }
 0x438   :  { %4570 = vmatpush3.msra.mxu1 %v2735_v26  ;;  %4595 = vmatpush3.msra.mxu0 %v2814_v27  ;;  %v3069_v26 = vld [vmem:[%s6257_s9] sm:$0xff]  ;;  %v3173_v27 = vld [vmem:[%s6255_s10 + $0xe8] sm:$0xff] }
 0x439   :  { %4571 = vmatprep.subr.mxu1 %v4644_v43  ;;  %4596 = vmatprep.mubr.msk.f32.mxu0 %vm4645_vm0, %v4644_v43 }
 0x43a   :  { %4572 = vmatpush3.msra.mxu1 %v2734_v28  ;;  %4597 = vmatmul.mubr.msk.f32.vlgmr.msra.gmra.mxu0 %vm2339_vm3, %v5760_v11  ;;  %v3172_v28 = vld [vmem:[%s6255_s10 + $0xe0] sm:$0xff] }
 0x43b   :  { %4573 = vmatprep.subr.mxu1 %v4644_v43  ;;  %4618 = vmatprep.subr.mxu0 %v4644_v43 }
 0x43c   :  { %4574 = vmatpush3.msra.mxu1 %v2733_v31  ;;  %4619 = vmatpush3.msra.mxu0 %v2985_v32  ;;  %v3169_v31 = vld [vmem:[%s6255_s10 + $0xc8] sm:$0xff]  ;;  %v3168_v32 = vld [vmem:[%s6255_s10 + $0xc0] sm:$0xff] }
 0x43d   :  { %4575 = vmatprep.subr.mxu1 %v4644_v43  ;;  %4620 = vmatprep.subr.mxu0 %v4644_v43 }
 0x43e   :  { %4576 = vmatpush3.msra.mxu1 %v2732_v33  ;;  %4621 = vmatpush3.msra.mxu0 %v2984_v34  ;;  %v3165_v33 = vld [vmem:[%s6255_s10 + $0xa8] sm:$0xff]  ;;  %v3164_v34 = vld [vmem:[%s6255_s10 + $0xa0] sm:$0xff] }
 0x43f   :  { %4578 = vmatmul.mubr.msk.f32.vlgmr.msra.gmra.mxu1 %vm2339_vm3, %v5740_v62  ;;  %4599 = vmatprep.subr.mxu1 %v4644_v43 }
 0x440   :  { %4600 = vmatpush3.msra.mxu1 %v2903_v35  ;;  %4622 = vmatprep.subr.mxu0 %v4644_v43  ;;  %v3161_v35 = vld [vmem:[%s6255_s10 + $0x88] sm:$0xff] }
 0x441   :  { %4601 = vmatprep.subr.mxu1 %v4644_v43  ;;  %4623 = vmatpush3.msra.mxu0 %v2983_v30  ;;  %v3160_v30 = vld [vmem:[%s6255_s10 + $0x80] sm:$0xff] }
 0x442   :  { %4602 = vmatpush3.msra.mxu1 %v2902_v36  ;;  %4624 = vmatprep.subr.mxu0 %v4644_v43  ;;  %v3156_v36 = vld [vmem:[%s6255_s10 + $0x60] sm:$0xff] }
 0x443   :  { %4603 = vmatprep.subr.mxu1 %v4644_v43  ;;  %4625 = vmatpush3.msra.mxu0 %v2982_v38  ;;  %v3153_v38 = vld [vmem:[%s6255_s10 + $0x48] sm:$0xff] }
 0x444   :  { %4604 = vmatpush3.msra.mxu1 %v2901_v40  ;;  %4626 = vmatprep.subr.mxu0 %v4644_v43  ;;  %v3152_v40 = vld [vmem:[%s6255_s10 + $0x40] sm:$0xff] }
 0x445   :  { %4605 = vmatprep.subr.mxu1 %v4644_v43  ;;  %4627 = vmatpush3.msra.mxu0 %v2981_v41  ;;  %v3149_v41 = vld [vmem:[%s6255_s10 + $0x28] sm:$0xff] }
 0x446   :  { %4606 = vmatpush3.msra.mxu1 %v2900_v42  ;;  %4628 = vmatprep.subr.mxu0 %v4644_v43  ;;  %v3148_v42 = vld [vmem:[%s6255_s10 + $0x20] sm:$0xff] }
 0x447   :  { %4607 = vmatprep.subr.mxu1 %v4644_v43  ;;  %4629 = vmatpush3.msra.mxu0 %v2980_v37  ;;  %v3145_v37 = vld [vmem:[%s6255_s10 + $0x8] sm:$0xff] }
 0x448   :  { %4608 = vmatpush3.msra.mxu1 %v2899_v29  ;;  %4630 = vmatprep.subr.mxu0 %v4644_v43  ;;  %v3150_v29 = vld [vmem:[%s6255_s10 + $0x30] sm:$0xff] }
 0x449   :  { %4609 = vmatprep.subr.mxu1 %v4644_v43  ;;  %4615 = vmatprep.mubr.msk.f32.mxu1 %vm4645_vm0, %v4644_v43 }
 0x44a   :  { %4610 = vmatpush3.msra.mxu1 %v2898_v44  ;;  %4631 = vmatpush3.msra.mxu0 %v2979_v45  ;;  %v3147_v44 = vld [vmem:[%s6255_s10 + $0x18] sm:$0xff]  ;;  %v3144_v45 = vld [vmem:[%s6255_s10] sm:$0xff] }
 0x44b   :  { %4611 = vmatprep.subr.mxu1 %v4644_v43  ;;  %4632 = vmatprep.subr.mxu0 %v4644_v43 }
 0x44c   :  { %4612 = vmatpush3.msra.mxu1 %v2897_v47  ;;  %4633 = vmatpush3.msra.mxu0 %v2978_v46  ;;  %v3146_v47 = vld [vmem:[%s6255_s10 + $0x10] sm:$0xff]  ;;  %v3378_v46 = vld [vmem:[%s6258_s12 + $0xf8] sm:$0xff] }
 0x44d   :  { %4613 = vmatprep.subr.mxu1 %v4644_v43  ;;  %4634 = vmatprep.mubr.msk.f32.mxu0 %vm4645_vm0, %v4644_v43 }
 0x44e   :  { %4614 = vmatpush3.msra.mxu1 %v2896_v48  ;;  %4635 = vmatmul.mubr.msk.f32.vlgmr.msra.gmra.mxu0 %vm2339_vm3, %v5795_v22  ;;  %v3410_v48 = vld [vmem:[%s6258_s12 + $0x1f8] sm:$0xff] }
 0x44f   :  { %4616 = vmatmul.mubr.msk.f32.vlgmr.msra.gmra.mxu1 %vm2339_vm3, %v5777_v18  ;;  %4637 = vmatprep.subr.mxu1 %v4644_v43 }
 0x450   :  { %4639 = vmatprep.mubr.msk.f32.mxu1 %vm4645_vm0, %v4644_v43  ;;  %3336 = vmatprep.mubr.f32.mxu0 %v4644_v43 }
 0x451   :  { %3288 = vmatprep.subr.mxu0 %v3175_v39  ;;  %v3362_v39 = vld [vmem:[%s6258_s12 + $0x78] sm:$0xff] }
 0x452   :  { %3289 = vmatpush1.msra.mxu0 %v3174_v49  ;;  %v3394_v49 = vld [vmem:[%s6258_s12 + $0x178] sm:$0xff] }
 0x453   :  { %3290 = vmatprep.subr.mxu0 %v3171_v51 }
 0x454   :  { %3291 = vmatpush1.msra.mxu0 %v3170_v52  ;;  %v3377_v52 = vld [vmem:[%s6258_s12 + $0xf0] sm:$0xff] }
 0x455   :  { %3292 = vmatprep.subr.mxu0 %v3167_v50  ;;  %v3409_v50 = vld [vmem:[%s6258_s12 + $0x1f0] sm:$0xff] }
 0x456   :  { %3293 = vmatpush1.msra.mxu0 %v3166_v53  ;;  %v3361_v53 = vld [vmem:[%s6258_s12 + $0x70] sm:$0xff] }
 0x457   :  { %3294 = vmatprep.subr.mxu0 %v3163_v54  ;;  %v3393_v54 = vld [vmem:[%s6258_s12 + $0x170] sm:$0xff] }
 0x458   :  { %3295 = vmatpush1.msra.mxu0 %v3162_v56 }
 0x459   :  { %3296 = vmatprep.subr.mxu0 %v3159_v57  ;;  %v3376_v57 = vld [vmem:[%s6258_s12 + $0xe8] sm:$0xff] }
 0x45a   :  { %3297 = vmatpush1.msra.mxu0 %v3158_v58  ;;  %v3408_v58 = vld [vmem:[%s6258_s12 + $0x1e8] sm:$0xff] }
 0x45b   :  { %3298 = vmatprep.subr.mxu0 %v3155_v59  ;;  %v3360_v59 = vld [vmem:[%s6258_s12 + $0x68] sm:$0xff] }
 0x45c   :  { %3299 = vmatpush1.msra.mxu0 %v3154_v55  ;;  %v3392_v55 = vld [vmem:[%s6258_s12 + $0x168] sm:$0xff] }
 0x45d   :  { %3300 = vmatprep.subr.mxu0 %v3151_v60  ;;  %v3375_v60 = vld [vmem:[%s6258_s12 + $0xe0] sm:$0xff] }
 0x45e   :  { %3301 = vmatpush1.msra.mxu0 %v3150_v29  ;;  %v3348_v29 = vld [vmem:[%s6258_s12 + $0x8] sm:$0xff] }
 0x45f   :  { %3302 = vmatprep.subr.mxu0 %v3147_v44  ;;  %v3380_v44 = vld [vmem:[%s6258_s12 + $0x108] sm:$0xff] }
 0x460   :  { %3303 = vmatpush1.msra.mxu0 %v3146_v47  ;;  %v3347_v47 = vld [vmem:[%s6258_s12] sm:$0xff] }
 0x461   :  { %4022 = vmatprep.subr.mxu0 %v3410_v48  ;;  %v3379_v48 = vld [vmem:[%s6258_s12 + $0x100] sm:$0xff] }
 0x4cf   :  { %v2409_v61 = vpop.f32.mrf.mxu1 }
 0x4d1   :  { %v4484_v62 = vpop.f32.mrf.mxu1 }
 0x4d2   :  { %v3359_v62 = vld [vmem:[%s6258_s12 + $0x60] sm:$0xff] }
 0x4d3   :  { %v2563_v0 = vpop.f32.mrf.mxu0 }
 0x4d5   :  { %v4522_v63 = vpop.f32.mrf.mxu0 }
 0x4d6   :  { %v3374_v63 = vld [vmem:[%s6258_s12 + $0xd8] sm:$0xff] }
 0x4df   :  { %v2482_v5 = vpop.f32.mrf.mxu1 }
 0x4e0   :  { %v2483_v18 = vadd.f32 %v2482_v5, %v2409_v61  ;;  %v3407_v61 = vld [vmem:[%s6258_s12 + $0x1e0] sm:$0xff]  ;;  %v3406_v5 = vld [vmem:[%s6258_s12 + $0x1d8] sm:$0xff] }
 0x4e1   :  { %v4503_v6 = vpop.f32.mrf.mxu1 }
 0x4e2   :  { %v2567_v15 = vadd.f32 %v2563_v0, %v2483_v18  ;;  %v3391_v0 = vld [vmem:[%s6258_s12 + $0x160] sm:$0xff]  ;;  %v3358_v6 = vld [vmem:[%s6258_s12 + $0x58] sm:$0xff]  ;;  %v3404_v18 = vld [vmem:[%s6258_s12 + $0x1c8] sm:$0xff] }
 0x4e6   :  { %v2727_v9 = vpop.f32.mrf.mxu0 }
 0x4e8   :  { %v4560_v11 = vpop.f32.mrf.mxu0 }
 0x4e9   :  { %v3373_v11 = vld [vmem:[%s6258_s12 + $0xd0] sm:$0xff] }
 0x4ef   :  { %v2645_v12 = vpop.f32.mrf.mxu1 }
 0x4f0   :  { %v2649_v20 = vadd.f32 %v2645_v12, %v2567_v15  ;;  %v3405_v12 = vld [vmem:[%s6258_s12 + $0x1d0] sm:$0xff]  ;;  %v3371_v15 = vld [vmem:[%s6258_s12 + $0xc0] sm:$0xff] }
 0x4f1   :  { %v4541_v16 = vpop.f32.mrf.mxu1 }
 0x4f2   :  { %v2731_v21 = vadd.f32 %v2727_v9, %v2649_v20  ;;  %v3390_v9 = vld [vmem:[%s6258_s12 + $0x158] sm:$0xff]  ;;  %v3357_v16 = vld [vmem:[%s6258_s12 + $0x50] sm:$0xff]  ;;  %v3403_v20 = vld [vmem:[%s6258_s12 + $0x1c0] sm:$0xff] }
 0x4fa   :  { %v2891_v8 = vpop.f32.mrf.mxu0 }
 0x4fc   :  { %v4598_v17 = vpop.f32.mrf.mxu0 }
 0x4fd   :  { %v3372_v17 = vld [vmem:[%s6258_s12 + $0xc8] sm:$0xff] }
 0x4ff   :  { %v2809_v19 = vpop.f32.mrf.mxu1 }
 0x500   :  { %v2813_v22 = vadd.f32 %v2809_v19, %v2731_v21  ;;  %v3356_v19 = vld [vmem:[%s6258_s12 + $0x48] sm:$0xff]  ;;  %v3355_v21 = vld [vmem:[%s6258_s12 + $0x40] sm:$0xff] }
 0x501   :  { %v4579_v14 = vpop.f32.mrf.mxu1 }
 0x502   :  { %v2895_v23 = vadd.f32 %v2891_v8, %v2813_v22  ;;  %v3389_v8 = vld [vmem:[%s6258_s12 + $0x150] sm:$0xff]  ;;  %v3388_v14 = vld [vmem:[%s6258_s12 + $0x148] sm:$0xff]  ;;  %v3387_v22 = vld [vmem:[%s6258_s12 + $0x140] sm:$0xff] }
 0x50e   :  { %v3055_v13 = vpop.f32.mrf.mxu0 }
 0x50f   :  { %v2973_v24 = vpop.f32.mrf.mxu1 }
 0x510   :  { %v2977_v3 = vadd.f32 %v2973_v24, %v2895_v23  ;;  %v4636_v4 = vpop.f32.mrf.mxu0  ;;  %v3370_v23 = vld [vmem:[%s6258_s12 + $0xb8] sm:$0xff] }
 0x511   :  { %v4617_v10 = vpop.f32.mrf.mxu1  ;;  %v3354_v24 = vld [vmem:[%s6258_s12 + $0x38] sm:$0xff]  ;;  %v3369_v4 = vld [vmem:[%s6258_s12 + $0xb0] sm:$0xff] }
 0x512   :  { %v3059_v2 = vadd.f32 %v3055_v13, %v2977_v3  ;;  %v3402_v13 = vld [vmem:[%s6258_s12 + $0x1b8] sm:$0xff]  ;;  %v3401_v10 = vld [vmem:[%s6258_s12 + $0x1b0] sm:$0xff] }
 0x513   :  { %v3386_v3 = vld [vmem:[%s6258_s12 + $0x138] sm:$0xff] }
 0x514   :  { %v3067_v7 = vadd.f32 %v3631_v1, %v3059_v2  ;;  %v3353_v1 = vld [vmem:[%s6258_s12 + $0x30] sm:$0xff] }
 0x515   :  { %v3385_v2 = vld [vmem:[%s6258_s12 + $0x130] sm:$0xff] }
 0x516   :  { %v3068_v25 = vmax.f32 %v3067_v7, 0.0  ;;  %v3368_v7 = vld [vmem:[%s6258_s12 + $0xa8] sm:$0xff] }
 0x518   :  { %4638 = vmatpush3.msra.mxu1 %v3068_v25  ;;  %v3400_v25 = vld [vmem:[%s6258_s12 + $0x1a8] sm:$0xff] }
 0x519   :  { %4640 = vmatmul.mubr.msk.f32.vlgmr.msra.gmra.mxu1 %vm3070_vm4, %v3069_v26  ;;  %3217 = vmatprep.subr.mxu1 %v3173_v27  ;;  %v3352_v26 = vld [vmem:[%s6258_s12 + $0x28] sm:$0xff] }
 0x51a   :  { %3218 = vmatpush1.msra.mxu1 %v3172_v28  ;;  %3265 = vmatprep.mubr.f32.mxu1 %v4644_v43  ;;  %v3157_v43 = vld [vmem:[%s6255_s10 + $0x68] sm:$0xff]  ;;  %v3367_v28 = vld [vmem:[%s6258_s12 + $0xa0] sm:$0xff] }
 0x51b   :  { %3219 = vmatprep.subr.mxu1 %v3169_v31  ;;  %v3384_v27 = vld [vmem:[%s6258_s12 + $0x128] sm:$0xff]  ;;  %v3351_v31 = vld [vmem:[%s6258_s12 + $0x20] sm:$0xff] }
 0x51c   :  { %3220 = vmatpush1.msra.mxu1 %v3168_v32  ;;  %v3399_v32 = vld [vmem:[%s6258_s12 + $0x1a0] sm:$0xff] }
 0x51d   :  { %3221 = vmatprep.subr.mxu1 %v3165_v33  ;;  %v3383_v33 = vld [vmem:[%s6258_s12 + $0x120] sm:$0xff] }
 0x51e   :  { %3222 = vmatpush1.msra.mxu1 %v3164_v34  ;;  %v3366_v34 = vld [vmem:[%s6258_s12 + $0x98] sm:$0xff] }
 0x51f   :  { %3223 = vmatprep.subr.mxu1 %v3161_v35  ;;  %v3398_v35 = vld [vmem:[%s6258_s12 + $0x198] sm:$0xff] }
 0x520   :  { %3224 = vmatpush1.msra.mxu1 %v3160_v30  ;;  %v3350_v30 = vld [vmem:[%s6258_s12 + $0x18] sm:$0xff] }
 0x521   :  { %3225 = vmatprep.subr.mxu1 %v3157_v43  ;;  %v3382_v43 = vld [vmem:[%s6258_s12 + $0x118] sm:$0xff] }
 0x522   :  { %3226 = vmatpush1.msra.mxu1 %v3156_v36  ;;  %v3365_v36 = vld [vmem:[%s6258_s12 + $0x90] sm:$0xff] }
 0x523   :  { %3227 = vmatprep.subr.mxu1 %v3153_v38  ;;  %v3397_v38 = vld [vmem:[%s6258_s12 + $0x190] sm:$0xff] }
 0x524   :  { %3228 = vmatpush1.msra.mxu1 %v3152_v40  ;;  %v3349_v40 = vld [vmem:[%s6258_s12 + $0x10] sm:$0xff] }
 0x525   :  { %3229 = vmatprep.subr.mxu1 %v3149_v41  ;;  %v3381_v41 = vld [vmem:[%s6258_s12 + $0x110] sm:$0xff] }
 0x526   :  { %3230 = vmatpush1.msra.mxu1 %v3148_v42  ;;  %v3364_v42 = vld [vmem:[%s6258_s12 + $0x88] sm:$0xff] }
 0x527   :  { %3231 = vmatprep.subr.mxu1 %v3145_v37  ;;  %v3396_v37 = vld [vmem:[%s6258_s12 + $0x188] sm:$0xff] }
 0x528   :  { %3232 = vmatpush1.msra.mxu1 %v3144_v45  ;;  %v3363_v45 = vld [vmem:[%s6258_s12 + $0x80] sm:$0xff] }
 0x529   :  { %3987 = vmatprep.subr.mxu1 %v3378_v46  ;;  %v3395_v46 = vld [vmem:[%s6258_s12 + $0x180] sm:$0xff] }
 0x5d9   :  { %v3140_v51 = vpop.f32.mrf.mxu1 }
 0x5da   :  { %3633 = vmatmul.mubr.msk.f32.vlgmr.msra.gmra.mxu1 %vm2339_vm3, %v3140_v51  ;;  %3634 = vmatmul.mubr.msk.f32.vlgmr.msra.gmra.mxu0 %vm2339_vm3, %v3140_v51 }
 0x5db   :  { %v4641_v56 = vpop.f32.mrf.mxu1  ;;  %3988 = vmatpush3.msra.mxu1 %v3362_v39  ;;  %4023 = vmatpush3.msra.mxu0 %v3394_v49  ;;  %v3178_v39 = vlaneseq }
 0x5dc   :  { %3989 = vmatprep.subr.mxu1 %v3377_v52  ;;  %4024 = vmatprep.subr.mxu0 %v3409_v50  ;;  %v3176_v50 = vld [vmem:[%s6259_s11] sm:$0xf] }
 0x5dd   :  { %3990 = vmatpush3.msra.mxu1 %v3361_v53  ;;  %4025 = vmatpush3.msra.mxu0 %v3393_v54  ;;  %v3179_v49 = vshrl.u32 %v3178_v39, 7 }
 0x5de   :  { %3991 = vmatprep.subr.mxu1 %v3376_v57  ;;  %4026 = vmatprep.subr.mxu0 %v3408_v58 }
 0x5df   :  { %3992 = vmatpush3.msra.mxu1 %v3360_v59  ;;  %4027 = vmatpush3.msra.mxu0 %v3392_v55  ;;  %v3180_v51 = vsub.s32 0, %v3179_v49  ;;  %v3188_v52 = vsub.s32 2, %v3179_v49  ;;  %v3184_v53 = vsub.s32 1, %v3179_v49  ;;  %v3192_v54 = vsub.s32 3, %v3179_v49 }
 0x5e0   :  { %3993 = vmatprep.subr.mxu1 %v3375_v60  ;;  %4028 = vmatprep.subr.mxu0 %v3407_v61 }
 0x5e1   :  { %3994 = vmatpush3.msra.mxu1 %v3359_v62  ;;  %4029 = vmatpush3.msra.mxu0 %v3391_v0  ;;  %v3181_v56 = vrot.slane %v3176_v50, %v3180_v51  ;;  %v3189_v57 = vrot.slane %v3176_v50, %v3188_v52  ;;  %v3185_v58 = vrot.slane %v3176_v50, %v3184_v53 }
 0x5e2   :  { %3995 = vmatprep.subr.mxu1 %v3374_v63  ;;  %4030 = vmatprep.subr.mxu0 %v3406_v5  ;;  %v3193_v59 = vrot.slane %v3176_v50, %v3192_v54 }
 0x5e3   :  { %3996 = vmatpush3.msra.mxu1 %v3358_v6  ;;  %4031 = vmatpush3.msra.mxu0 %v3390_v9 }
 0x5e4   :  { %3997 = vmatprep.subr.mxu1 %v3373_v11  ;;  %4032 = vmatprep.subr.mxu0 %v3405_v12 }
 0x5e5   :  { %3998 = vmatpush3.msra.mxu1 %v3357_v16  ;;  %4033 = vmatpush3.msra.mxu0 %v3389_v8 }
 0x5e6   :  { %3999 = vmatprep.subr.mxu1 %v3372_v17  ;;  %4034 = vmatprep.subr.mxu0 %v3404_v18  ;;  %v3635_v18 = vld [vmem:[%s6260_s13] ss:$0 sm:$0xff] }
 0x5e7   :  { %4000 = vmatpush3.msra.mxu1 %v3356_v19  ;;  %4035 = vmatpush3.msra.mxu0 %v3388_v14 }
 0x5e8   :  { %4001 = vmatprep.subr.mxu1 %v3371_v15  ;;  %4036 = vmatprep.subr.mxu0 %v3403_v20 }
 0x5e9   :  { %4002 = vmatpush3.msra.mxu1 %v3355_v21  ;;  %4037 = vmatpush3.msra.mxu0 %v3387_v22 }
 0x5ea   :  { %4003 = vmatprep.subr.mxu1 %v3370_v23  ;;  %4038 = vmatprep.subr.mxu0 %v3402_v13 }
 0x5eb   :  { %4004 = vmatpush3.msra.mxu1 %v3354_v24  ;;  %4039 = vmatpush3.msra.mxu0 %v3386_v3 }
 0x5ec   :  { %4005 = vmatprep.subr.mxu1 %v3369_v4  ;;  %4040 = vmatprep.subr.mxu0 %v3401_v10 }
 0x5ed   :  { %4006 = vmatpush3.msra.mxu1 %v3353_v1  ;;  %4041 = vmatpush3.msra.mxu0 %v3385_v2 }
 0x5ee   :  { %4007 = vmatprep.subr.mxu1 %v3368_v7  ;;  %4042 = vmatprep.subr.mxu0 %v3400_v25 }
 0x5ef   :  { %4008 = vmatpush3.msra.mxu1 %v3352_v26  ;;  %4043 = vmatpush3.msra.mxu0 %v3384_v27 }
 0x5f0   :  { %4009 = vmatprep.subr.mxu1 %v3367_v28  ;;  %4044 = vmatprep.subr.mxu0 %v3399_v32 }
 0x5f1   :  { %4010 = vmatpush3.msra.mxu1 %v3351_v31  ;;  %4045 = vmatpush3.msra.mxu0 %v3383_v33 }
 0x5f2   :  { %4011 = vmatprep.subr.mxu1 %v3366_v34  ;;  %4046 = vmatprep.subr.mxu0 %v3398_v35 }
 0x5f3   :  { %4012 = vmatpush3.msra.mxu1 %v3350_v30  ;;  %4047 = vmatpush3.msra.mxu0 %v3382_v43 }
 0x5f4   :  { %4013 = vmatprep.subr.mxu1 %v3365_v36  ;;  %4048 = vmatprep.subr.mxu0 %v3397_v38 }
 0x5f5   :  { %4014 = vmatpush3.msra.mxu1 %v3349_v40  ;;  %4049 = vmatpush3.msra.mxu0 %v3381_v41 }
 0x5f6   :  { %4015 = vmatprep.subr.mxu1 %v3364_v42  ;;  %4050 = vmatprep.subr.mxu0 %v3396_v37 }
 0x5f7   :  { %4016 = vmatpush3.msra.mxu1 %v3348_v29  ;;  %4051 = vmatpush3.msra.mxu0 %v3380_v44 }
 0x5f8   :  { %4017 = vmatprep.subr.mxu1 %v3363_v45  ;;  %4052 = vmatprep.subr.mxu0 %v3395_v46 }
 0x5f9   :  { %4018 = vmatpush3.msra.mxu1 %v3347_v47  ;;  %4053 = vmatpush3.msra.mxu0 %v3379_v48 }
 0x69a   :  { %v3267_v55 = vpop.f32.mrf.mxu1  ;;  %v3338_v60 = vpop.f32.mrf.mxu0 }
 0x69b   :  { %v3268_v61 = vadd.f32 %v3267_v55, %v3181_v56  ;;  %v3339_v0 = vadd.f32 %v3338_v60, %v3189_v57 }
 0x69c   :  { %v3269_v62 = vpop.f32.mrf.mxu1  ;;  %v3340_v63 = vpop.f32.mrf.mxu0 }
 0x69d   :  { %v3270_v5 = vadd.f32 %v3269_v62, %v3185_v58  ;;  %v3341_v6 = vadd.f32 %v3340_v63, %v3193_v59  ;;  %v3343_v12 = vmax.f32 %v3268_v61, 0.0  ;;  %v3345_v16 = vmax.f32 %v3339_v0, 0.0 }
 0x69f   :  { %v3344_v9 = vmax.f32 %v3270_v5, 0.0  ;;  %v3346_v11 = vmax.f32 %v3341_v6, 0.0 }
 0x6a1   :  { %3482 = vmatprep.mubr.f32.mxu1 %v3344_v9  ;;  %3552 = vmatprep.mubr.f32.mxu0 %v3346_v11 }
 0x6a2   :  { %3483 = vmatmul.mubr.f32.vlgmr.msra.gmra.mxu1 %v3343_v12  ;;  %3553 = vmatmul.mubr.f32.vlgmr.msra.gmra.mxu0 %v3345_v16 }
 0x762   :  { %v4019_v8 = vpop.f32.mrf.mxu1  ;;  %v4054_v17 = vpop.f32.mrf.mxu0 }
 0x764   :  { %v4020_v19 = vpop.f32.mrf.mxu1  ;;  %v4055_v14 = vpop.f32.mrf.mxu0 }
 0x765   :  { %v4021_v15 = vadd.f32 %v4020_v19, %v4019_v8  ;;  %v4056_v21 = vadd.f32 %v4055_v14, %v4054_v17 }
 0x767   :  { %v3485_v20 = vadd.f32 %v4021_v15, %v3635_v18 }
 0x769   :  { %v3555_v22 = vadd.f32 %v4056_v21, %v3485_v20 }
 0x76b   :  { %3558 = vst [vmem:[%s6261_s14] sm:$0xff] %v3555_v22 }

</bundles_post_ra>
